<compile_context>
chip_gen: v6e
topology: v6e:2x2x1
jax: 0.10.0
libtpu: 0.0.40
codegen_flags: <defaults>
</compile_context>

<pallas_src>
import jax
import jax.numpy as jnp
from jax.experimental import pallas as pl
from jax.experimental.pallas import tpu as pltpu


# ------------------------------ fused kernel ---------------------------------
def _make_fused_kernel(n_layers, T, B, H, C):
    """Kernel refs: x, (w_ih_t, w_hh_t, bias) * n_layers, w_fc_t, b_fc, out."""

    def kernel(*refs):
        x_ref = refs[0]                               # (B, T, F) f32
        layer_refs = refs[1:1 + 3 * n_layers]         # per layer: bf16 W's + f32 bias
        w_fc_ref = refs[1 + 3 * n_layers]             # (H, C) f32
        b_fc_ref = refs[2 + 3 * n_layers]             # (1, C) f32
        o_ref = refs[3 + 3 * n_layers]                # (B, T, C) f32

        # Hoist every weight load out of the unrolled recurrence (loaded once).
        w_ih = [layer_refs[3 * l][...] for l in range(n_layers)]      # (F_in, 4H) bf16
        w_hh = [layer_refs[3 * l + 1][...] for l in range(n_layers)]  # (H,   4H) bf16
        bias = [layer_refs[3 * l + 2][...] for l in range(n_layers)]  # (1,   4H) f32
        w_fc = w_fc_ref[...]
        b_fc = b_fc_ref[...]

        h = [jnp.zeros((B, H), jnp.float32) for _ in range(n_layers)]
        c = [jnp.zeros((B, H), jnp.float32) for _ in range(n_layers)]

        def cell(g, c_prev):
            # Full 4H=128-lane sigmoid/tanh, then slice the H-lane quarters
            # (removes per-gate lane extraction + 4 separate EUP launches per step).
            s = jax.nn.sigmoid(g)                     # f32 gate math (v5e-safe)
            th = jnp.tanh(g)
            i_g = s[:, 0:H]
            f_g = s[:, H:2 * H]
            o_g = s[:, 3 * H:4 * H]
            g_g = th[:, 2 * H:3 * H]
            c_new = f_g * c_prev + i_g * g_g
            h_new = o_g * jnp.tanh(c_new)
            return h_new, c_new

        # (t, layer) wavefront: cell (t, l) only needs (t-1, l) and (t, l-1), so the
        # emitted dataflow has a T+L-deep dependent chain; the LLO scheduler overlaps
        # one layer's MXU/EUP latency with the other layer's gate math.
        for t in range(T):                            # static unroll — T is tiny
            inp = x_ref[:, t, :]                      # (B, F) ref slice (off-chain)
            for l in range(n_layers):
                g = (jnp.dot(inp.astype(jnp.bfloat16), w_ih[l],
                             preferred_element_type=jnp.float32)
                     + jnp.dot(h[l].astype(jnp.bfloat16), w_hh[l],
                               preferred_element_type=jnp.float32)
                     + bias[l])                       # (B, 4H) f32
                h[l], c[l] = cell(g, c[l])
                inp = h[l]                            # feeds layer l+1 at this t

            # Fused FC epilogue per timestep, stored directly in (b, t) row order so
            # the wrapper needs only a free contiguous reshape (no transpose launch).
            logit = (jnp.dot(jax.nn.sigmoid(h[n_layers - 1]), w_fc,
                             preferred_element_type=jnp.float32) + b_fc)   # (B, C)
            o_ref[:, t, :] = logit.astype(o_ref.dtype)

    return kernel


def fused_lstm_fc(x, layer_params, w_fc_t, b_fc, *, H, C):
    """x: (B, T, F) batch-first input -> (B, T, C) logits (rows already b-major)."""
    B, T, _ = x.shape
    n_layers = len(layer_params)
    flat = [x]
    for (w_ih_t, w_hh_t, b) in layer_params:
        flat += [w_ih_t, w_hh_t, b]
    flat += [w_fc_t, b_fc]

    kernel = _make_fused_kernel(n_layers, T, B, H, C)
    return pl.pallas_call(
        kernel,
        out_shape=jax.ShapeDtypeStruct((B, T, C), jnp.float32),
        in_specs=[pl.BlockSpec(memory_space=pltpu.MemorySpace.VMEM)] * len(flat),
        out_specs=pl.BlockSpec(memory_space=pltpu.MemorySpace.VMEM),
    )(*flat)


# ------------------------------ full module ----------------------------------
class LSTM1Pallas:
    def __init__(self, input_feature_size, hidden_size, n_classes, n_layers, key):
        self.input_feature_size = input_feature_size
        self.hidden_size = hidden_size
        self.n_classes = n_classes
        self.n_layers = n_layers

        H = hidden_size
        bound = 1.0 / (H ** 0.5)
        self.ref_params = []      # f32 masters (semantic reference)
        self.kernel_params = []   # bf16 MXU-operand copies fed to the kernel
        for layer in range(n_layers):
            in_size = input_feature_size if layer == 0 else H
            key, k1, k2, k3, k4 = jax.random.split(key, 5)
            # Stored pre-transposed (lane-dense 4H=128 last dim), PyTorch gate order.
            w_ih_t = jax.random.uniform(k1, (in_size, 4 * H), jnp.float32, -bound, bound)
            w_hh_t = jax.random.uniform(k2, (H, 4 * H), jnp.float32, -bound, bound)
            b_ih = jax.random.uniform(k3, (4 * H,), jnp.float32, -bound, bound)
            b_hh = jax.random.uniform(k4, (4 * H,), jnp.float32, -bound, bound)
            bias = (b_ih + b_hh).reshape(1, 4 * H)
            self.ref_params.append((w_ih_t, w_hh_t, bias))
            self.kernel_params.append(
                (w_ih_t.astype(jnp.bfloat16), w_hh_t.astype(jnp.bfloat16), bias))

        key, k5, k6 = jax.random.split(key, 3)
        self.w_fc_t = jax.random.uniform(k5, (H, n_classes), jnp.float32, -bound, bound)
        self.b_fc = jax.random.uniform(k6, (1, n_classes), jnp.float32, -bound, bound)

    def __call__(self, x):
        # x: (B, T, input_feature_size), batch_first like the PyTorch module.
        B, T, _ = x.shape
        out_btc = fused_lstm_fc(x.astype(jnp.float32), self.kernel_params,
                                self.w_fc_t, self.b_fc,
                                H=self.hidden_size, C=self.n_classes)   # (B, T, C)
        # PyTorch: out.contiguous().view(-1, H) -> rows b*T + t.  Contiguous reshape only.
        return out_btc.reshape(B * T, self.n_classes)


# --------------------------- references --------------------------------------
def _reference_f32(model, x):
    """Plain float32 multi-layer LSTM + sigmoid + FC (semantic reference)."""
    B, T, _ = x.shape
    H = model.hidden_size
    seq = jnp.transpose(x, (1, 0, 2)).astype(jnp.float32)              # (T, B, F)
    for (w_ih_t, w_hh_t, bias) in model.ref_params:
        h = jnp.zeros((B, H), jnp.float32)
        c = jnp.zeros((B, H), jnp.float32)
        outs = []
        for t in range(T):
            g = seq[t] @ w_ih_t + h @ w_hh_t + bias
            i = jax.nn.sigmoid(g[:, 0:H])
            f = jax.nn.sigmoid(g[:, H:2 * H])
            gg = jnp.tanh(g[:, 2 * H:3 * H])
            o = jax.nn.sigmoid(g[:, 3 * H:4 * H])
            c = f * c + i * gg
            h = o * jnp.tanh(c)
            outs.append(h)
        seq = jnp.stack(outs, axis=0)
    flat = jnp.transpose(seq, (1, 0, 2)).reshape(B * T, H)             # rows b*T + t
    return jax.nn.sigmoid(flat) @ model.w_fc_t + model.b_fc


def _reference_matched(model, x):
    """Precision/structure-matched reference (bf16 MXU operands, f32 accumulation)."""
    B, T, _ = x.shape
    H, C, L = model.hidden_size, model.n_classes, model.n_layers
    h = [jnp.zeros((B, H), jnp.float32) for _ in range(L)]
    c = [jnp.zeros((B, H), jnp.float32) for _ in range(L)]
    rows = []
    for t in range(T):
        inp = x[:, t, :].astype(jnp.float32)
        for l in range(L):
            w_ih_t, w_hh_t, bias = model.kernel_params[l]
            g = (jnp.dot(inp.astype(jnp.bfloat16), w_ih_t,
                         preferred_element_type=jnp.float32)
                 + jnp.dot(h[l].astype(jnp.bfloat16), w_hh_t,
                           preferred_element_type=jnp.float32)
                 + bias)
            i = jax.nn.sigmoid(g[:, 0:H])
            f = jax.nn.sigmoid(g[:, H:2 * H])
            gg = jnp.tanh(g[:, 2 * H:3 * H])
            o = jax.nn.sigmoid(g[:, 3 * H:4 * H])
            c[l] = f * c[l] + i * gg
            h[l] = o * jnp.tanh(c[l])
            inp = h[l]
        rows.append(jnp.dot(jax.nn.sigmoid(h[L - 1]), model.w_fc_t,
                            preferred_element_type=jnp.float32) + model.b_fc)  # (B, C)
    return jnp.stack(rows, axis=1).reshape(B * T, C)


if __name__ == "__main__":
    key = jax.random.PRNGKey(0)
    k_param, k_x = jax.random.split(key)

    batch, seq_len, feat, hidden, n_classes, n_layers = 2, 8, 16, 32, 4, 2
    model = LSTM1Pallas(feat, hidden, n_classes, n_layers, k_param)

    x = jax.random.normal(k_x, (batch, seq_len, feat), jnp.float32)

    out = jax.block_until_ready(model(x))
    assert out.shape == (batch * seq_len, n_classes)

    # Tight check vs. a bf16-matmul-matched reference (implementation correctness) ...
    ref_m = _reference_matched(model, x)
    assert jnp.allclose(out, ref_m, atol=1e-2, rtol=1e-2), float(jnp.max(jnp.abs(out - ref_m)))
    # ... and a looser check vs. the pure-f32 LSTM (semantics; kernel uses bf16 MXU operands).
    ref_f = _reference_f32(model, x)
    assert jnp.allclose(out, ref_f, atol=6e-2, rtol=6e-2), float(jnp.max(jnp.abs(out - ref_f)))

    print("KERNEL_OK")
</pallas_src>

<mosaic_0001>
module attributes {stable_mosaic.version = 11 : i64} {
  func.func @kernel(%arg0: memref<2x8x16xf32, #tpu.memory_space<vmem>>, %arg1: memref<16x128xbf16, #tpu.memory_space<vmem>>, %arg2: memref<32x128xbf16, #tpu.memory_space<vmem>>, %arg3: memref<1x128xf32, #tpu.memory_space<vmem>>, %arg4: memref<32x128xbf16, #tpu.memory_space<vmem>>, %arg5: memref<32x128xbf16, #tpu.memory_space<vmem>>, %arg6: memref<1x128xf32, #tpu.memory_space<vmem>>, %arg7: memref<32x4xf32, #tpu.memory_space<vmem>>, %arg8: memref<1x4xf32, #tpu.memory_space<vmem>>, %arg9: memref<2x8x4xf32, #tpu.memory_space<vmem>>) attributes {dimension_semantics = [], scalar_prefetch = 0 : i64, scratch_operands = 0 : i64, tpu.core_type = #tpu.core_type<tc>} {
    %c0 = arith.constant 0 : index
    %c0_0 = arith.constant 0 : index
    %0 = vector.load %arg1[%c0, %c0_0] : memref<16x128xbf16, #tpu.memory_space<vmem>>, vector<16x128xbf16>
    %c0_1 = arith.constant 0 : index
    %c0_2 = arith.constant 0 : index
    %1 = vector.load %arg4[%c0_1, %c0_2] : memref<32x128xbf16, #tpu.memory_space<vmem>>, vector<32x128xbf16>
    %c0_3 = arith.constant 0 : index
    %c0_4 = arith.constant 0 : index
    %2 = vector.load %arg2[%c0_3, %c0_4] : memref<32x128xbf16, #tpu.memory_space<vmem>>, vector<32x128xbf16>
    %c0_5 = arith.constant 0 : index
    %c0_6 = arith.constant 0 : index
    %3 = vector.load %arg5[%c0_5, %c0_6] : memref<32x128xbf16, #tpu.memory_space<vmem>>, vector<32x128xbf16>
    %c0_7 = arith.constant 0 : index
    %c0_8 = arith.constant 0 : index
    %4 = vector.load %arg3[%c0_7, %c0_8] : memref<1x128xf32, #tpu.memory_space<vmem>>, vector<1x128xf32>
    %c0_9 = arith.constant 0 : index
    %c0_10 = arith.constant 0 : index
    %5 = vector.load %arg6[%c0_9, %c0_10] : memref<1x128xf32, #tpu.memory_space<vmem>>, vector<1x128xf32>
    %c0_11 = arith.constant 0 : index
    %c0_12 = arith.constant 0 : index
    %6 = vector.load %arg7[%c0_11, %c0_12] : memref<32x4xf32, #tpu.memory_space<vmem>>, vector<32x4xf32>
    %c0_13 = arith.constant 0 : index
    %c0_14 = arith.constant 0 : index
    %7 = vector.load %arg8[%c0_13, %c0_14] : memref<1x4xf32, #tpu.memory_space<vmem>>, vector<1x4xf32>
    %cst = arith.constant 0.000000e+00 : f32
    %8 = vector.broadcast %cst : f32 to vector<2x32xf32>
    %cst_15 = arith.constant 0.000000e+00 : f32
    %9 = vector.broadcast %cst_15 : f32 to vector<2x32xf32>
    %cst_16 = arith.constant 0.000000e+00 : f32
    %10 = vector.broadcast %cst_16 : f32 to vector<2x32xf32>
    %cst_17 = arith.constant 0.000000e+00 : f32
    %11 = vector.broadcast %cst_17 : f32 to vector<2x32xf32>
    %c0_18 = arith.constant 0 : index
    %c0_19 = arith.constant 0 : index
    %c0_20 = arith.constant 0 : index
    %12 = vector.load %arg0[%c0_18, %c0_19, %c0_20] : memref<2x8x16xf32, #tpu.memory_space<vmem>>, vector<2x1x16xf32>
    %13 = vector.shape_cast %12 : vector<2x1x16xf32> to vector<2x16xf32>
    %14 = arith.truncf %13 : vector<2x16xf32> to vector<2x16xbf16>
    %cst_21 = arith.constant dense<0.000000e+00> : vector<2x128xf32>
    %15 = tpu.matmul %14, %0, %cst_21 {dimension_numbers = #tpu.dot_dimension_numbers<[1], [0], [0], [1], [0, 0, 1, 1], [], []>} : vector<2x16xbf16>, vector<16x128xbf16>, vector<2x128xf32> -> vector<2x128xf32>
    %16 = arith.truncf %8 : vector<2x32xf32> to vector<2x32xbf16>
    %cst_22 = arith.constant dense<0.000000e+00> : vector<2x128xf32>
    %17 = tpu.matmul %16, %2, %cst_22 {dimension_numbers = #tpu.dot_dimension_numbers<[1], [0], [0], [1], [0, 0, 1, 1], [], []>} : vector<2x32xbf16>, vector<32x128xbf16>, vector<2x128xf32> -> vector<2x128xf32>
    %18 = arith.addf %15, %17 : vector<2x128xf32>
    %19 = vector.broadcast %4 : vector<1x128xf32> to vector<2x128xf32>
    %20 = arith.addf %18, %19 : vector<2x128xf32>
    %21 = arith.negf %20 : vector<2x128xf32>
    %22 = math.exp %21 : vector<2x128xf32>
    %cst_23 = arith.constant 1.000000e+00 : f32
    %23 = vector.broadcast %cst_23 : f32 to vector<2x128xf32>
    %24 = arith.addf %23, %22 : vector<2x128xf32>
    %25 = arith.divf %23, %24 : vector<2x128xf32>
    %26 = math.tanh %20 : vector<2x128xf32>
    %27 = vector.extract_strided_slice %25 {offsets = [0, 0], sizes = [2, 32], strides = [1, 1]} : vector<2x128xf32> to vector<2x32xf32>
    %28 = vector.extract_strided_slice %25 {offsets = [0, 32], sizes = [2, 32], strides = [1, 1]} : vector<2x128xf32> to vector<2x32xf32>
    %29 = vector.extract_strided_slice %25 {offsets = [0, 96], sizes = [2, 32], strides = [1, 1]} : vector<2x128xf32> to vector<2x32xf32>
    %30 = vector.extract_strided_slice %26 {offsets = [0, 64], sizes = [2, 32], strides = [1, 1]} : vector<2x128xf32> to vector<2x32xf32>
    %31 = arith.mulf %28, %10 : vector<2x32xf32>
    %32 = arith.mulf %27, %30 : vector<2x32xf32>
    %33 = arith.addf %31, %32 : vector<2x32xf32>
    %34 = math.tanh %33 : vector<2x32xf32>
    %35 = arith.mulf %29, %34 : vector<2x32xf32>
    %36 = arith.truncf %35 : vector<2x32xf32> to vector<2x32xbf16>
    %cst_24 = arith.constant dense<0.000000e+00> : vector<2x128xf32>
    %37 = tpu.matmul %36, %1, %cst_24 {dimension_numbers = #tpu.dot_dimension_numbers<[1], [0], [0], [1], [0, 0, 1, 1], [], []>} : vector<2x32xbf16>, vector<32x128xbf16>, vector<2x128xf32> -> vector<2x128xf32>
    %38 = arith.truncf %9 : vector<2x32xf32> to vector<2x32xbf16>
    %cst_25 = arith.constant dense<0.000000e+00> : vector<2x128xf32>
    %39 = tpu.matmul %38, %3, %cst_25 {dimension_numbers = #tpu.dot_dimension_numbers<[1], [0], [0], [1], [0, 0, 1, 1], [], []>} : vector<2x32xbf16>, vector<32x128xbf16>, vector<2x128xf32> -> vector<2x128xf32>
    %40 = arith.addf %37, %39 : vector<2x128xf32>
    %41 = vector.broadcast %5 : vector<1x128xf32> to vector<2x128xf32>
    %42 = arith.addf %40, %41 : vector<2x128xf32>
    %43 = arith.negf %42 : vector<2x128xf32>
    %44 = math.exp %43 : vector<2x128xf32>
    %cst_26 = arith.constant 1.000000e+00 : f32
    %45 = vector.broadcast %cst_26 : f32 to vector<2x128xf32>
    %46 = arith.addf %45, %44 : vector<2x128xf32>
    %47 = arith.divf %45, %46 : vector<2x128xf32>
    %48 = math.tanh %42 : vector<2x128xf32>
    %49 = vector.extract_strided_slice %47 {offsets = [0, 0], sizes = [2, 32], strides = [1, 1]} : vector<2x128xf32> to vector<2x32xf32>
    %50 = vector.extract_strided_slice %47 {offsets = [0, 32], sizes = [2, 32], strides = [1, 1]} : vector<2x128xf32> to vector<2x32xf32>
    %51 = vector.extract_strided_slice %47 {offsets = [0, 96], sizes = [2, 32], strides = [1, 1]} : vector<2x128xf32> to vector<2x32xf32>
    %52 = vector.extract_strided_slice %48 {offsets = [0, 64], sizes = [2, 32], strides = [1, 1]} : vector<2x128xf32> to vector<2x32xf32>
    %53 = arith.mulf %50, %11 : vector<2x32xf32>
    %54 = arith.mulf %49, %52 : vector<2x32xf32>
    %55 = arith.addf %53, %54 : vector<2x32xf32>
    %56 = math.tanh %55 : vector<2x32xf32>
    %57 = arith.mulf %51, %56 : vector<2x32xf32>
    %58 = arith.negf %57 : vector<2x32xf32>
    %59 = math.exp %58 : vector<2x32xf32>
    %cst_27 = arith.constant 1.000000e+00 : f32
    %60 = vector.broadcast %cst_27 : f32 to vector<2x32xf32>
    %61 = arith.addf %60, %59 : vector<2x32xf32>
    %62 = arith.divf %60, %61 : vector<2x32xf32>
    %cst_28 = arith.constant dense<0.000000e+00> : vector<2x4xf32>
    %63 = tpu.matmul %62, %6, %cst_28 {dimension_numbers = #tpu.dot_dimension_numbers<[1], [0], [0], [1], [0, 0, 1, 1], [], []>} : vector<2x32xf32>, vector<32x4xf32>, vector<2x4xf32> -> vector<2x4xf32>
    %64 = vector.broadcast %7 : vector<1x4xf32> to vector<2x4xf32>
    %65 = arith.addf %63, %64 : vector<2x4xf32>
    %c0_29 = arith.constant 0 : index
    %c0_30 = arith.constant 0 : index
    %c0_31 = arith.constant 0 : index
    %66 = vector.load %arg9[%c0_29, %c0_30, %c0_31] : memref<2x8x4xf32, #tpu.memory_space<vmem>>, vector<2x1x4xf32>
    %67 = vector.shape_cast %66 : vector<2x1x4xf32> to vector<2x4xf32>
    %68 = vector.shape_cast %65 : vector<2x4xf32> to vector<2x1x4xf32>
    tpu.vector_store %arg9[%c0_29, %c0_30, %c0_31], %68 {strides = array<i32>} : memref<2x8x4xf32, #tpu.memory_space<vmem>>, vector<2x1x4xf32>,
    %c0_32 = arith.constant 0 : index
    %c1 = arith.constant 1 : index
    %c0_33 = arith.constant 0 : index
    %69 = vector.load %arg0[%c0_32, %c1, %c0_33] : memref<2x8x16xf32, #tpu.memory_space<vmem>>, vector<2x1x16xf32>
    %70 = vector.shape_cast %69 : vector<2x1x16xf32> to vector<2x16xf32>
    %71 = arith.truncf %70 : vector<2x16xf32> to vector<2x16xbf16>
    %cst_34 = arith.constant dense<0.000000e+00> : vector<2x128xf32>
    %72 = tpu.matmul %71, %0, %cst_34 {dimension_numbers = #tpu.dot_dimension_numbers<[1], [0], [0], [1], [0, 0, 1, 1], [], []>} : vector<2x16xbf16>, vector<16x128xbf16>, vector<2x128xf32> -> vector<2x128xf32>
    %73 = arith.truncf %35 : vector<2x32xf32> to vector<2x32xbf16>
    %cst_35 = arith.constant dense<0.000000e+00> : vector<2x128xf32>
    %74 = tpu.matmul %73, %2, %cst_35 {dimension_numbers = #tpu.dot_dimension_numbers<[1], [0], [0], [1], [0, 0, 1, 1], [], []>} : vector<2x32xbf16>, vector<32x128xbf16>, vector<2x128xf32> -> vector<2x128xf32>
    %75 = arith.addf %72, %74 : vector<2x128xf32>
    %76 = vector.broadcast %4 : vector<1x128xf32> to vector<2x128xf32>
    %77 = arith.addf %75, %76 : vector<2x128xf32>
    %78 = arith.negf %77 : vector<2x128xf32>
    %79 = math.exp %78 : vector<2x128xf32>
    %cst_36 = arith.constant 1.000000e+00 : f32
    %80 = vector.broadcast %cst_36 : f32 to vector<2x128xf32>
    %81 = arith.addf %80, %79 : vector<2x128xf32>
    %82 = arith.divf %80, %81 : vector<2x128xf32>
    %83 = math.tanh %77 : vector<2x128xf32>
    %84 = vector.extract_strided_slice %82 {offsets = [0, 0], sizes = [2, 32], strides = [1, 1]} : vector<2x128xf32> to vector<2x32xf32>
    %85 = vector.extract_strided_slice %82 {offsets = [0, 32], sizes = [2, 32], strides = [1, 1]} : vector<2x128xf32> to vector<2x32xf32>
    %86 = vector.extract_strided_slice %82 {offsets = [0, 96], sizes = [2, 32], strides = [1, 1]} : vector<2x128xf32> to vector<2x32xf32>
    %87 = vector.extract_strided_slice %83 {offsets = [0, 64], sizes = [2, 32], strides = [1, 1]} : vector<2x128xf32> to vector<2x32xf32>
    %88 = arith.mulf %85, %33 : vector<2x32xf32>
    %89 = arith.mulf %84, %87 : vector<2x32xf32>
    %90 = arith.addf %88, %89 : vector<2x32xf32>
    %91 = math.tanh %90 : vector<2x32xf32>
    %92 = arith.mulf %86, %91 : vector<2x32xf32>
    %93 = arith.truncf %92 : vector<2x32xf32> to vector<2x32xbf16>
    %cst_37 = arith.constant dense<0.000000e+00> : vector<2x128xf32>
    %94 = tpu.matmul %93, %1, %cst_37 {dimension_numbers = #tpu.dot_dimension_numbers<[1], [0], [0], [1], [0, 0, 1, 1], [], []>} : vector<2x32xbf16>, vector<32x128xbf16>, vector<2x128xf32> -> vector<2x128xf32>
    %95 = arith.truncf %57 : vector<2x32xf32> to vector<2x32xbf16>
    %cst_38 = arith.constant dense<0.000000e+00> : vector<2x128xf32>
    %96 = tpu.matmul %95, %3, %cst_38 {dimension_numbers = #tpu.dot_dimension_numbers<[1], [0], [0], [1], [0, 0, 1, 1], [], []>} : vector<2x32xbf16>, vector<32x128xbf16>, vector<2x128xf32> -> vector<2x128xf32>
    %97 = arith.addf %94, %96 : vector<2x128xf32>
    %98 = vector.broadcast %5 : vector<1x128xf32> to vector<2x128xf32>
    %99 = arith.addf %97, %98 : vector<2x128xf32>
    %100 = arith.negf %99 : vector<2x128xf32>
    %101 = math.exp %100 : vector<2x128xf32>
    %cst_39 = arith.constant 1.000000e+00 : f32
    %102 = vector.broadcast %cst_39 : f32 to vector<2x128xf32>
    %103 = arith.addf %102, %101 : vector<2x128xf32>
    %104 = arith.divf %102, %103 : vector<2x128xf32>
    %105 = math.tanh %99 : vector<2x128xf32>
    %106 = vector.extract_strided_slice %104 {offsets = [0, 0], sizes = [2, 32], strides = [1, 1]} : vector<2x128xf32> to vector<2x32xf32>
    %107 = vector.extract_strided_slice %104 {offsets = [0, 32], sizes = [2, 32], strides = [1, 1]} : vector<2x128xf32> to vector<2x32xf32>
    %108 = vector.extract_strided_slice %104 {offsets = [0, 96], sizes = [2, 32], strides = [1, 1]} : vector<2x128xf32> to vector<2x32xf32>
    %109 = vector.extract_strided_slice %105 {offsets = [0, 64], sizes = [2, 32], strides = [1, 1]} : vector<2x128xf32> to vector<2x32xf32>
    %110 = arith.mulf %107, %55 : vector<2x32xf32>
    %111 = arith.mulf %106, %109 : vector<2x32xf32>
    %112 = arith.addf %110, %111 : vector<2x32xf32>
    %113 = math.tanh %112 : vector<2x32xf32>
    %114 = arith.mulf %108, %113 : vector<2x32xf32>
    %115 = arith.negf %114 : vector<2x32xf32>
    %116 = math.exp %115 : vector<2x32xf32>
    %cst_40 = arith.constant 1.000000e+00 : f32
    %117 = vector.broadcast %cst_40 : f32 to vector<2x32xf32>
    %118 = arith.addf %117, %116 : vector<2x32xf32>
    %119 = arith.divf %117, %118 : vector<2x32xf32>
    %cst_41 = arith.constant dense<0.000000e+00> : vector<2x4xf32>
    %120 = tpu.matmul %119, %6, %cst_41 {dimension_numbers = #tpu.dot_dimension_numbers<[1], [0], [0], [1], [0, 0, 1, 1], [], []>} : vector<2x32xf32>, vector<32x4xf32>, vector<2x4xf32> -> vector<2x4xf32>
    %121 = vector.broadcast %7 : vector<1x4xf32> to vector<2x4xf32>
    %122 = arith.addf %120, %121 : vector<2x4xf32>
    %c0_42 = arith.constant 0 : index
    %c1_43 = arith.constant 1 : index
    %c0_44 = arith.constant 0 : index
    %123 = vector.load %arg9[%c0_42, %c1_43, %c0_44] : memref<2x8x4xf32, #tpu.memory_space<vmem>>, vector<2x1x4xf32>
    %124 = vector.shape_cast %123 : vector<2x1x4xf32> to vector<2x4xf32>
    %125 = vector.shape_cast %122 : vector<2x4xf32> to vector<2x1x4xf32>
    tpu.vector_store %arg9[%c0_42, %c1_43, %c0_44], %125 {strides = array<i32>} : memref<2x8x4xf32, #tpu.memory_space<vmem>>, vector<2x1x4xf32>,
    %c0_45 = arith.constant 0 : index
    %c2 = arith.constant 2 : index
    %c0_46 = arith.constant 0 : index
    %126 = vector.load %arg0[%c0_45, %c2, %c0_46] : memref<2x8x16xf32, #tpu.memory_space<vmem>>, vector<2x1x16xf32>
    %127 = vector.shape_cast %126 : vector<2x1x16xf32> to vector<2x16xf32>
    %128 = arith.truncf %127 : vector<2x16xf32> to vector<2x16xbf16>
    %cst_47 = arith.constant dense<0.000000e+00> : vector<2x128xf32>
    %129 = tpu.matmul %128, %0, %cst_47 {dimension_numbers = #tpu.dot_dimension_numbers<[1], [0], [0], [1], [0, 0, 1, 1], [], []>} : vector<2x16xbf16>, vector<16x128xbf16>, vector<2x128xf32> -> vector<2x128xf32>
    %130 = arith.truncf %92 : vector<2x32xf32> to vector<2x32xbf16>
    %cst_48 = arith.constant dense<0.000000e+00> : vector<2x128xf32>
    %131 = tpu.matmul %130, %2, %cst_48 {dimension_numbers = #tpu.dot_dimension_numbers<[1], [0], [0], [1], [0, 0, 1, 1], [], []>} : vector<2x32xbf16>, vector<32x128xbf16>, vector<2x128xf32> -> vector<2x128xf32>
    %132 = arith.addf %129, %131 : vector<2x128xf32>
    %133 = vector.broadcast %4 : vector<1x128xf32> to vector<2x128xf32>
    %134 = arith.addf %132, %133 : vector<2x128xf32>
    %135 = arith.negf %134 : vector<2x128xf32>
    %136 = math.exp %135 : vector<2x128xf32>
    %cst_49 = arith.constant 1.000000e+00 : f32
    %137 = vector.broadcast %cst_49 : f32 to vector<2x128xf32>
    %138 = arith.addf %137, %136 : vector<2x128xf32>
    %139 = arith.divf %137, %138 : vector<2x128xf32>
    %140 = math.tanh %134 : vector<2x128xf32>
    %141 = vector.extract_strided_slice %139 {offsets = [0, 0], sizes = [2, 32], strides = [1, 1]} : vector<2x128xf32> to vector<2x32xf32>
    %142 = vector.extract_strided_slice %139 {offsets = [0, 32], sizes = [2, 32], strides = [1, 1]} : vector<2x128xf32> to vector<2x32xf32>
    %143 = vector.extract_strided_slice %139 {offsets = [0, 96], sizes = [2, 32], strides = [1, 1]} : vector<2x128xf32> to vector<2x32xf32>
    %144 = vector.extract_strided_slice %140 {offsets = [0, 64], sizes = [2, 32], strides = [1, 1]} : vector<2x128xf32> to vector<2x32xf32>
    %145 = arith.mulf %142, %90 : vector<2x32xf32>
    %146 = arith.mulf %141, %144 : vector<2x32xf32>
    %147 = arith.addf %145, %146 : vector<2x32xf32>
    %148 = math.tanh %147 : vector<2x32xf32>
    %149 = arith.mulf %143, %148 : vector<2x32xf32>
    %150 = arith.truncf %149 : vector<2x32xf32> to vector<2x32xbf16>
    %cst_50 = arith.constant dense<0.000000e+00> : vector<2x128xf32>
    %151 = tpu.matmul %150, %1, %cst_50 {dimension_numbers = #tpu.dot_dimension_numbers<[1], [0], [0], [1], [0, 0, 1, 1], [], []>} : vector<2x32xbf16>, vector<32x128xbf16>, vector<2x128xf32> -> vector<2x128xf32>
    %152 = arith.truncf %114 : vector<2x32xf32> to vector<2x32xbf16>
    %cst_51 = arith.constant dense<0.000000e+00> : vector<2x128xf32>
    %153 = tpu.matmul %152, %3, %cst_51 {dimension_numbers = #tpu.dot_dimension_numbers<[1], [0], [0], [1], [0, 0, 1, 1], [], []>} : vector<2x32xbf16>, vector<32x128xbf16>, vector<2x128xf32> -> vector<2x128xf32>
    %154 = arith.addf %151, %153 : vector<2x128xf32>
    %155 = vector.broadcast %5 : vector<1x128xf32> to vector<2x128xf32>
    %156 = arith.addf %154, %155 : vector<2x128xf32>
    %157 = arith.negf %156 : vector<2x128xf32>
    %158 = math.exp %157 : vector<2x128xf32>
    %cst_52 = arith.constant 1.000000e+00 : f32
    %159 = vector.broadcast %cst_52 : f32 to vector<2x128xf32>
    %160 = arith.addf %159, %158 : vector<2x128xf32>
    %161 = arith.divf %159, %160 : vector<2x128xf32>
    %162 = math.tanh %156 : vector<2x128xf32>
    %163 = vector.extract_strided_slice %161 {offsets = [0, 0], sizes = [2, 32], strides = [1, 1]} : vector<2x128xf32> to vector<2x32xf32>
    %164 = vector.extract_strided_slice %161 {offsets = [0, 32], sizes = [2, 32], strides = [1, 1]} : vector<2x128xf32> to vector<2x32xf32>
    %165 = vector.extract_strided_slice %161 {offsets = [0, 96], sizes = [2, 32], strides = [1, 1]} : vector<2x128xf32> to vector<2x32xf32>
    %166 = vector.extract_strided_slice %162 {offsets = [0, 64], sizes = [2, 32], strides = [1, 1]} : vector<2x128xf32> to vector<2x32xf32>
    %167 = arith.mulf %164, %112 : vector<2x32xf32>
    %168 = arith.mulf %163, %166 : vector<2x32xf32>
    %169 = arith.addf %167, %168 : vector<2x32xf32>
    %170 = math.tanh %169 : vector<2x32xf32>
    %171 = arith.mulf %165, %170 : vector<2x32xf32>
    %172 = arith.negf %171 : vector<2x32xf32>
    %173 = math.exp %172 : vector<2x32xf32>
    %cst_53 = arith.constant 1.000000e+00 : f32
    %174 = vector.broadcast %cst_53 : f32 to vector<2x32xf32>
    %175 = arith.addf %174, %173 : vector<2x32xf32>
    %176 = arith.divf %174, %175 : vector<2x32xf32>
    %cst_54 = arith.constant dense<0.000000e+00> : vector<2x4xf32>
    %177 = tpu.matmul %176, %6, %cst_54 {dimension_numbers = #tpu.dot_dimension_numbers<[1], [0], [0], [1], [0, 0, 1, 1], [], []>} : vector<2x32xf32>, vector<32x4xf32>, vector<2x4xf32> -> vector<2x4xf32>
    %178 = vector.broadcast %7 : vector<1x4xf32> to vector<2x4xf32>
    %179 = arith.addf %177, %178 : vector<2x4xf32>
    %c0_55 = arith.constant 0 : index
    %c2_56 = arith.constant 2 : index
    %c0_57 = arith.constant 0 : index
    %180 = vector.load %arg9[%c0_55, %c2_56, %c0_57] : memref<2x8x4xf32, #tpu.memory_space<vmem>>, vector<2x1x4xf32>
    %181 = vector.shape_cast %180 : vector<2x1x4xf32> to vector<2x4xf32>
    %182 = vector.shape_cast %179 : vector<2x4xf32> to vector<2x1x4xf32>
    tpu.vector_store %arg9[%c0_55, %c2_56, %c0_57], %182 {strides = array<i32>} : memref<2x8x4xf32, #tpu.memory_space<vmem>>, vector<2x1x4xf32>,
    %c0_58 = arith.constant 0 : index
    %c3 = arith.constant 3 : index
    %c0_59 = arith.constant 0 : index
    %183 = vector.load %arg0[%c0_58, %c3, %c0_59] : memref<2x8x16xf32, #tpu.memory_space<vmem>>, vector<2x1x16xf32>
    %184 = vector.shape_cast %183 : vector<2x1x16xf32> to vector<2x16xf32>
    %185 = arith.truncf %184 : vector<2x16xf32> to vector<2x16xbf16>
    %cst_60 = arith.constant dense<0.000000e+00> : vector<2x128xf32>
    %186 = tpu.matmul %185, %0, %cst_60 {dimension_numbers = #tpu.dot_dimension_numbers<[1], [0], [0], [1], [0, 0, 1, 1], [], []>} : vector<2x16xbf16>, vector<16x128xbf16>, vector<2x128xf32> -> vector<2x128xf32>
    %187 = arith.truncf %149 : vector<2x32xf32> to vector<2x32xbf16>
    %cst_61 = arith.constant dense<0.000000e+00> : vector<2x128xf32>
    %188 = tpu.matmul %187, %2, %cst_61 {dimension_numbers = #tpu.dot_dimension_numbers<[1], [0], [0], [1], [0, 0, 1, 1], [], []>} : vector<2x32xbf16>, vector<32x128xbf16>, vector<2x128xf32> -> vector<2x128xf32>
    %189 = arith.addf %186, %188 : vector<2x128xf32>
    %190 = vector.broadcast %4 : vector<1x128xf32> to vector<2x128xf32>
    %191 = arith.addf %189, %190 : vector<2x128xf32>
    %192 = arith.negf %191 : vector<2x128xf32>
    %193 = math.exp %192 : vector<2x128xf32>
    %cst_62 = arith.constant 1.000000e+00 : f32
    %194 = vector.broadcast %cst_62 : f32 to vector<2x128xf32>
    %195 = arith.addf %194, %193 : vector<2x128xf32>
    %196 = arith.divf %194, %195 : vector<2x128xf32>
    %197 = math.tanh %191 : vector<2x128xf32>
    %198 = vector.extract_strided_slice %196 {offsets = [0, 0], sizes = [2, 32], strides = [1, 1]} : vector<2x128xf32> to vector<2x32xf32>
    %199 = vector.extract_strided_slice %196 {offsets = [0, 32], sizes = [2, 32], strides = [1, 1]} : vector<2x128xf32> to vector<2x32xf32>
    %200 = vector.extract_strided_slice %196 {offsets = [0, 96], sizes = [2, 32], strides = [1, 1]} : vector<2x128xf32> to vector<2x32xf32>
    %201 = vector.extract_strided_slice %197 {offsets = [0, 64], sizes = [2, 32], strides = [1, 1]} : vector<2x128xf32> to vector<2x32xf32>
    %202 = arith.mulf %199, %147 : vector<2x32xf32>
    %203 = arith.mulf %198, %201 : vector<2x32xf32>
    %204 = arith.addf %202, %203 : vector<2x32xf32>
    %205 = math.tanh %204 : vector<2x32xf32>
    %206 = arith.mulf %200, %205 : vector<2x32xf32>
    %207 = arith.truncf %206 : vector<2x32xf32> to vector<2x32xbf16>
    %cst_63 = arith.constant dense<0.000000e+00> : vector<2x128xf32>
    %208 = tpu.matmul %207, %1, %cst_63 {dimension_numbers = #tpu.dot_dimension_numbers<[1], [0], [0], [1], [0, 0, 1, 1], [], []>} : vector<2x32xbf16>, vector<32x128xbf16>, vector<2x128xf32> -> vector<2x128xf32>
    %209 = arith.truncf %171 : vector<2x32xf32> to vector<2x32xbf16>
    %cst_64 = arith.constant dense<0.000000e+00> : vector<2x128xf32>
    %210 = tpu.matmul %209, %3, %cst_64 {dimension_numbers = #tpu.dot_dimension_numbers<[1], [0], [0], [1], [0, 0, 1, 1], [], []>} : vector<2x32xbf16>, vector<32x128xbf16>, vector<2x128xf32> -> vector<2x128xf32>
    %211 = arith.addf %208, %210 : vector<2x128xf32>
    %212 = vector.broadcast %5 : vector<1x128xf32> to vector<2x128xf32>
    %213 = arith.addf %211, %212 : vector<2x128xf32>
    %214 = arith.negf %213 : vector<2x128xf32>
    %215 = math.exp %214 : vector<2x128xf32>
    %cst_65 = arith.constant 1.000000e+00 : f32
    %216 = vector.broadcast %cst_65 : f32 to vector<2x128xf32>
    %217 = arith.addf %216, %215 : vector<2x128xf32>
    %218 = arith.divf %216, %217 : vector<2x128xf32>
    %219 = math.tanh %213 : vector<2x128xf32>
    %220 = vector.extract_strided_slice %218 {offsets = [0, 0], sizes = [2, 32], strides = [1, 1]} : vector<2x128xf32> to vector<2x32xf32>
    %221 = vector.extract_strided_slice %218 {offsets = [0, 32], sizes = [2, 32], strides = [1, 1]} : vector<2x128xf32> to vector<2x32xf32>
    %222 = vector.extract_strided_slice %218 {offsets = [0, 96], sizes = [2, 32], strides = [1, 1]} : vector<2x128xf32> to vector<2x32xf32>
    %223 = vector.extract_strided_slice %219 {offsets = [0, 64], sizes = [2, 32], strides = [1, 1]} : vector<2x128xf32> to vector<2x32xf32>
    %224 = arith.mulf %221, %169 : vector<2x32xf32>
    %225 = arith.mulf %220, %223 : vector<2x32xf32>
    %226 = arith.addf %224, %225 : vector<2x32xf32>
    %227 = math.tanh %226 : vector<2x32xf32>
    %228 = arith.mulf %222, %227 : vector<2x32xf32>
    %229 = arith.negf %228 : vector<2x32xf32>
    %230 = math.exp %229 : vector<2x32xf32>
    %cst_66 = arith.constant 1.000000e+00 : f32
    %231 = vector.broadcast %cst_66 : f32 to vector<2x32xf32>
    %232 = arith.addf %231, %230 : vector<2x32xf32>
    %233 = arith.divf %231, %232 : vector<2x32xf32>
    %cst_67 = arith.constant dense<0.000000e+00> : vector<2x4xf32>
    %234 = tpu.matmul %233, %6, %cst_67 {dimension_numbers = #tpu.dot_dimension_numbers<[1], [0], [0], [1], [0, 0, 1, 1], [], []>} : vector<2x32xf32>, vector<32x4xf32>, vector<2x4xf32> -> vector<2x4xf32>
    %235 = vector.broadcast %7 : vector<1x4xf32> to vector<2x4xf32>
    %236 = arith.addf %234, %235 : vector<2x4xf32>
    %c0_68 = arith.constant 0 : index
    %c3_69 = arith.constant 3 : index
    %c0_70 = arith.constant 0 : index
    %237 = vector.load %arg9[%c0_68, %c3_69, %c0_70] : memref<2x8x4xf32, #tpu.memory_space<vmem>>, vector<2x1x4xf32>
    %238 = vector.shape_cast %237 : vector<2x1x4xf32> to vector<2x4xf32>
    %239 = vector.shape_cast %236 : vector<2x4xf32> to vector<2x1x4xf32>
    tpu.vector_store %arg9[%c0_68, %c3_69, %c0_70], %239 {strides = array<i32>} : memref<2x8x4xf32, #tpu.memory_space<vmem>>, vector<2x1x4xf32>,
    %c0_71 = arith.constant 0 : index
    %c4 = arith.constant 4 : index
    %c0_72 = arith.constant 0 : index
    %240 = vector.load %arg0[%c0_71, %c4, %c0_72] : memref<2x8x16xf32, #tpu.memory_space<vmem>>, vector<2x1x16xf32>
    %241 = vector.shape_cast %240 : vector<2x1x16xf32> to vector<2x16xf32>
    %242 = arith.truncf %241 : vector<2x16xf32> to vector<2x16xbf16>
    %cst_73 = arith.constant dense<0.000000e+00> : vector<2x128xf32>
    %243 = tpu.matmul %242, %0, %cst_73 {dimension_numbers = #tpu.dot_dimension_numbers<[1], [0], [0], [1], [0, 0, 1, 1], [], []>} : vector<2x16xbf16>, vector<16x128xbf16>, vector<2x128xf32> -> vector<2x128xf32>
    %244 = arith.truncf %206 : vector<2x32xf32> to vector<2x32xbf16>
    %cst_74 = arith.constant dense<0.000000e+00> : vector<2x128xf32>
    %245 = tpu.matmul %244, %2, %cst_74 {dimension_numbers = #tpu.dot_dimension_numbers<[1], [0], [0], [1], [0, 0, 1, 1], [], []>} : vector<2x32xbf16>, vector<32x128xbf16>, vector<2x128xf32> -> vector<2x128xf32>
    %246 = arith.addf %243, %245 : vector<2x128xf32>
    %247 = vector.broadcast %4 : vector<1x128xf32> to vector<2x128xf32>
    %248 = arith.addf %246, %247 : vector<2x128xf32>
    %249 = arith.negf %248 : vector<2x128xf32>
    %250 = math.exp %249 : vector<2x128xf32>
    %cst_75 = arith.constant 1.000000e+00 : f32
    %251 = vector.broadcast %cst_75 : f32 to vector<2x128xf32>
    %252 = arith.addf %251, %250 : vector<2x128xf32>
    %253 = arith.divf %251, %252 : vector<2x128xf32>
    %254 = math.tanh %248 : vector<2x128xf32>
    %255 = vector.extract_strided_slice %253 {offsets = [0, 0], sizes = [2, 32], strides = [1, 1]} : vector<2x128xf32> to vector<2x32xf32>
    %256 = vector.extract_strided_slice %253 {offsets = [0, 32], sizes = [2, 32], strides = [1, 1]} : vector<2x128xf32> to vector<2x32xf32>
    %257 = vector.extract_strided_slice %253 {offsets = [0, 96], sizes = [2, 32], strides = [1, 1]} : vector<2x128xf32> to vector<2x32xf32>
    %258 = vector.extract_strided_slice %254 {offsets = [0, 64], sizes = [2, 32], strides = [1, 1]} : vector<2x128xf32> to vector<2x32xf32>
    %259 = arith.mulf %256, %204 : vector<2x32xf32>
    %260 = arith.mulf %255, %258 : vector<2x32xf32>
    %261 = arith.addf %259, %260 : vector<2x32xf32>
    %262 = math.tanh %261 : vector<2x32xf32>
    %263 = arith.mulf %257, %262 : vector<2x32xf32>
    %264 = arith.truncf %263 : vector<2x32xf32> to vector<2x32xbf16>
    %cst_76 = arith.constant dense<0.000000e+00> : vector<2x128xf32>
    %265 = tpu.matmul %264, %1, %cst_76 {dimension_numbers = #tpu.dot_dimension_numbers<[1], [0], [0], [1], [0, 0, 1, 1], [], []>} : vector<2x32xbf16>, vector<32x128xbf16>, vector<2x128xf32> -> vector<2x128xf32>
    %266 = arith.truncf %228 : vector<2x32xf32> to vector<2x32xbf16>
    %cst_77 = arith.constant dense<0.000000e+00> : vector<2x128xf32>
    %267 = tpu.matmul %266, %3, %cst_77 {dimension_numbers = #tpu.dot_dimension_numbers<[1], [0], [0], [1], [0, 0, 1, 1], [], []>} : vector<2x32xbf16>, vector<32x128xbf16>, vector<2x128xf32> -> vector<2x128xf32>
    %268 = arith.addf %265, %267 : vector<2x128xf32>
    %269 = vector.broadcast %5 : vector<1x128xf32> to vector<2x128xf32>
    %270 = arith.addf %268, %269 : vector<2x128xf32>
    %271 = arith.negf %270 : vector<2x128xf32>
    %272 = math.exp %271 : vector<2x128xf32>
    %cst_78 = arith.constant 1.000000e+00 : f32
    %273 = vector.broadcast %cst_78 : f32 to vector<2x128xf32>
    %274 = arith.addf %273, %272 : vector<2x128xf32>
    %275 = arith.divf %273, %274 : vector<2x128xf32>
    %276 = math.tanh %270 : vector<2x128xf32>
    %277 = vector.extract_strided_slice %275 {offsets = [0, 0], sizes = [2, 32], strides = [1, 1]} : vector<2x128xf32> to vector<2x32xf32>
    %278 = vector.extract_strided_slice %275 {offsets = [0, 32], sizes = [2, 32], strides = [1, 1]} : vector<2x128xf32> to vector<2x32xf32>
    %279 = vector.extract_strided_slice %275 {offsets = [0, 96], sizes = [2, 32], strides = [1, 1]} : vector<2x128xf32> to vector<2x32xf32>
    %280 = vector.extract_strided_slice %276 {offsets = [0, 64], sizes = [2, 32], strides = [1, 1]} : vector<2x128xf32> to vector<2x32xf32>
    %281 = arith.mulf %278, %226 : vector<2x32xf32>
    %282 = arith.mulf %277, %280 : vector<2x32xf32>
    %283 = arith.addf %281, %282 : vector<2x32xf32>
    %284 = math.tanh %283 : vector<2x32xf32>
    %285 = arith.mulf %279, %284 : vector<2x32xf32>
    %286 = arith.negf %285 : vector<2x32xf32>
    %287 = math.exp %286 : vector<2x32xf32>
    %cst_79 = arith.constant 1.000000e+00 : f32
    %288 = vector.broadcast %cst_79 : f32 to vector<2x32xf32>
    %289 = arith.addf %288, %287 : vector<2x32xf32>
    %290 = arith.divf %288, %289 : vector<2x32xf32>
    %cst_80 = arith.constant dense<0.000000e+00> : vector<2x4xf32>
    %291 = tpu.matmul %290, %6, %cst_80 {dimension_numbers = #tpu.dot_dimension_numbers<[1], [0], [0], [1], [0, 0, 1, 1], [], []>} : vector<2x32xf32>, vector<32x4xf32>, vector<2x4xf32> -> vector<2x4xf32>
    %292 = vector.broadcast %7 : vector<1x4xf32> to vector<2x4xf32>
    %293 = arith.addf %291, %292 : vector<2x4xf32>
    %c0_81 = arith.constant 0 : index
    %c4_82 = arith.constant 4 : index
    %c0_83 = arith.constant 0 : index
    %294 = vector.load %arg9[%c0_81, %c4_82, %c0_83] : memref<2x8x4xf32, #tpu.memory_space<vmem>>, vector<2x1x4xf32>
    %295 = vector.shape_cast %294 : vector<2x1x4xf32> to vector<2x4xf32>
    %296 = vector.shape_cast %293 : vector<2x4xf32> to vector<2x1x4xf32>
    tpu.vector_store %arg9[%c0_81, %c4_82, %c0_83], %296 {strides = array<i32>} : memref<2x8x4xf32, #tpu.memory_space<vmem>>, vector<2x1x4xf32>,
    %c0_84 = arith.constant 0 : index
    %c5 = arith.constant 5 : index
    %c0_85 = arith.constant 0 : index
    %297 = vector.load %arg0[%c0_84, %c5, %c0_85] : memref<2x8x16xf32, #tpu.memory_space<vmem>>, vector<2x1x16xf32>
    %298 = vector.shape_cast %297 : vector<2x1x16xf32> to vector<2x16xf32>
    %299 = arith.truncf %298 : vector<2x16xf32> to vector<2x16xbf16>
    %cst_86 = arith.constant dense<0.000000e+00> : vector<2x128xf32>
    %300 = tpu.matmul %299, %0, %cst_86 {dimension_numbers = #tpu.dot_dimension_numbers<[1], [0], [0], [1], [0, 0, 1, 1], [], []>} : vector<2x16xbf16>, vector<16x128xbf16>, vector<2x128xf32> -> vector<2x128xf32>
    %301 = arith.truncf %263 : vector<2x32xf32> to vector<2x32xbf16>
    %cst_87 = arith.constant dense<0.000000e+00> : vector<2x128xf32>
    %302 = tpu.matmul %301, %2, %cst_87 {dimension_numbers = #tpu.dot_dimension_numbers<[1], [0], [0], [1], [0, 0, 1, 1], [], []>} : vector<2x32xbf16>, vector<32x128xbf16>, vector<2x128xf32> -> vector<2x128xf32>
    %303 = arith.addf %300, %302 : vector<2x128xf32>
    %304 = vector.broadcast %4 : vector<1x128xf32> to vector<2x128xf32>
    %305 = arith.addf %303, %304 : vector<2x128xf32>
    %306 = arith.negf %305 : vector<2x128xf32>
    %307 = math.exp %306 : vector<2x128xf32>
    %cst_88 = arith.constant 1.000000e+00 : f32
    %308 = vector.broadcast %cst_88 : f32 to vector<2x128xf32>
    %309 = arith.addf %308, %307 : vector<2x128xf32>
    %310 = arith.divf %308, %309 : vector<2x128xf32>
    %311 = math.tanh %305 : vector<2x128xf32>
    %312 = vector.extract_strided_slice %310 {offsets = [0, 0], sizes = [2, 32], strides = [1, 1]} : vector<2x128xf32> to vector<2x32xf32>
    %313 = vector.extract_strided_slice %310 {offsets = [0, 32], sizes = [2, 32], strides = [1, 1]} : vector<2x128xf32> to vector<2x32xf32>
    %314 = vector.extract_strided_slice %310 {offsets = [0, 96], sizes = [2, 32], strides = [1, 1]} : vector<2x128xf32> to vector<2x32xf32>
    %315 = vector.extract_strided_slice %311 {offsets = [0, 64], sizes = [2, 32], strides = [1, 1]} : vector<2x128xf32> to vector<2x32xf32>
    %316 = arith.mulf %313, %261 : vector<2x32xf32>
    %317 = arith.mulf %312, %315 : vector<2x32xf32>
    %318 = arith.addf %316, %317 : vector<2x32xf32>
    %319 = math.tanh %318 : vector<2x32xf32>
    %320 = arith.mulf %314, %319 : vector<2x32xf32>
    %321 = arith.truncf %320 : vector<2x32xf32> to vector<2x32xbf16>
    %cst_89 = arith.constant dense<0.000000e+00> : vector<2x128xf32>
    %322 = tpu.matmul %321, %1, %cst_89 {dimension_numbers = #tpu.dot_dimension_numbers<[1], [0], [0], [1], [0, 0, 1, 1], [], []>} : vector<2x32xbf16>, vector<32x128xbf16>, vector<2x128xf32> -> vector<2x128xf32>
    %323 = arith.truncf %285 : vector<2x32xf32> to vector<2x32xbf16>
    %cst_90 = arith.constant dense<0.000000e+00> : vector<2x128xf32>
    %324 = tpu.matmul %323, %3, %cst_90 {dimension_numbers = #tpu.dot_dimension_numbers<[1], [0], [0], [1], [0, 0, 1, 1], [], []>} : vector<2x32xbf16>, vector<32x128xbf16>, vector<2x128xf32> -> vector<2x128xf32>
    %325 = arith.addf %322, %324 : vector<2x128xf32>
    %326 = vector.broadcast %5 : vector<1x128xf32> to vector<2x128xf32>
    %327 = arith.addf %325, %326 : vector<2x128xf32>
    %328 = arith.negf %327 : vector<2x128xf32>
    %329 = math.exp %328 : vector<2x128xf32>
    %cst_91 = arith.constant 1.000000e+00 : f32
    %330 = vector.broadcast %cst_91 : f32 to vector<2x128xf32>
    %331 = arith.addf %330, %329 : vector<2x128xf32>
    %332 = arith.divf %330, %331 : vector<2x128xf32>
    %333 = math.tanh %327 : vector<2x128xf32>
    %334 = vector.extract_strided_slice %332 {offsets = [0, 0], sizes = [2, 32], strides = [1, 1]} : vector<2x128xf32> to vector<2x32xf32>
    %335 = vector.extract_strided_slice %332 {offsets = [0, 32], sizes = [2, 32], strides = [1, 1]} : vector<2x128xf32> to vector<2x32xf32>
    %336 = vector.extract_strided_slice %332 {offsets = [0, 96], sizes = [2, 32], strides = [1, 1]} : vector<2x128xf32> to vector<2x32xf32>
    %337 = vector.extract_strided_slice %333 {offsets = [0, 64], sizes = [2, 32], strides = [1, 1]} : vector<2x128xf32> to vector<2x32xf32>
    %338 = arith.mulf %335, %283 : vector<2x32xf32>
    %339 = arith.mulf %334, %337 : vector<2x32xf32>
    %340 = arith.addf %338, %339 : vector<2x32xf32>
    %341 = math.tanh %340 : vector<2x32xf32>
    %342 = arith.mulf %336, %341 : vector<2x32xf32>
    %343 = arith.negf %342 : vector<2x32xf32>
    %344 = math.exp %343 : vector<2x32xf32>
    %cst_92 = arith.constant 1.000000e+00 : f32
    %345 = vector.broadcast %cst_92 : f32 to vector<2x32xf32>
    %346 = arith.addf %345, %344 : vector<2x32xf32>
    %347 = arith.divf %345, %346 : vector<2x32xf32>
    %cst_93 = arith.constant dense<0.000000e+00> : vector<2x4xf32>
    %348 = tpu.matmul %347, %6, %cst_93 {dimension_numbers = #tpu.dot_dimension_numbers<[1], [0], [0], [1], [0, 0, 1, 1], [], []>} : vector<2x32xf32>, vector<32x4xf32>, vector<2x4xf32> -> vector<2x4xf32>
    %349 = vector.broadcast %7 : vector<1x4xf32> to vector<2x4xf32>
    %350 = arith.addf %348, %349 : vector<2x4xf32>
    %c0_94 = arith.constant 0 : index
    %c5_95 = arith.constant 5 : index
    %c0_96 = arith.constant 0 : index
    %351 = vector.load %arg9[%c0_94, %c5_95, %c0_96] : memref<2x8x4xf32, #tpu.memory_space<vmem>>, vector<2x1x4xf32>
    %352 = vector.shape_cast %351 : vector<2x1x4xf32> to vector<2x4xf32>
    %353 = vector.shape_cast %350 : vector<2x4xf32> to vector<2x1x4xf32>
    tpu.vector_store %arg9[%c0_94, %c5_95, %c0_96], %353 {strides = array<i32>} : memref<2x8x4xf32, #tpu.memory_space<vmem>>, vector<2x1x4xf32>,
    %c0_97 = arith.constant 0 : index
    %c6 = arith.constant 6 : index
    %c0_98 = arith.constant 0 : index
    %354 = vector.load %arg0[%c0_97, %c6, %c0_98] : memref<2x8x16xf32, #tpu.memory_space<vmem>>, vector<2x1x16xf32>
    %355 = vector.shape_cast %354 : vector<2x1x16xf32> to vector<2x16xf32>
    %356 = arith.truncf %355 : vector<2x16xf32> to vector<2x16xbf16>
    %cst_99 = arith.constant dense<0.000000e+00> : vector<2x128xf32>
    %357 = tpu.matmul %356, %0, %cst_99 {dimension_numbers = #tpu.dot_dimension_numbers<[1], [0], [0], [1], [0, 0, 1, 1], [], []>} : vector<2x16xbf16>, vector<16x128xbf16>, vector<2x128xf32> -> vector<2x128xf32>
    %358 = arith.truncf %320 : vector<2x32xf32> to vector<2x32xbf16>
    %cst_100 = arith.constant dense<0.000000e+00> : vector<2x128xf32>
    %359 = tpu.matmul %358, %2, %cst_100 {dimension_numbers = #tpu.dot_dimension_numbers<[1], [0], [0], [1], [0, 0, 1, 1], [], []>} : vector<2x32xbf16>, vector<32x128xbf16>, vector<2x128xf32> -> vector<2x128xf32>
    %360 = arith.addf %357, %359 : vector<2x128xf32>
    %361 = vector.broadcast %4 : vector<1x128xf32> to vector<2x128xf32>
    %362 = arith.addf %360, %361 : vector<2x128xf32>
    %363 = arith.negf %362 : vector<2x128xf32>
    %364 = math.exp %363 : vector<2x128xf32>
    %cst_101 = arith.constant 1.000000e+00 : f32
    %365 = vector.broadcast %cst_101 : f32 to vector<2x128xf32>
    %366 = arith.addf %365, %364 : vector<2x128xf32>
    %367 = arith.divf %365, %366 : vector<2x128xf32>
    %368 = math.tanh %362 : vector<2x128xf32>
    %369 = vector.extract_strided_slice %367 {offsets = [0, 0], sizes = [2, 32], strides = [1, 1]} : vector<2x128xf32> to vector<2x32xf32>
    %370 = vector.extract_strided_slice %367 {offsets = [0, 32], sizes = [2, 32], strides = [1, 1]} : vector<2x128xf32> to vector<2x32xf32>
    %371 = vector.extract_strided_slice %367 {offsets = [0, 96], sizes = [2, 32], strides = [1, 1]} : vector<2x128xf32> to vector<2x32xf32>
    %372 = vector.extract_strided_slice %368 {offsets = [0, 64], sizes = [2, 32], strides = [1, 1]} : vector<2x128xf32> to vector<2x32xf32>
    %373 = arith.mulf %370, %318 : vector<2x32xf32>
    %374 = arith.mulf %369, %372 : vector<2x32xf32>
    %375 = arith.addf %373, %374 : vector<2x32xf32>
    %376 = math.tanh %375 : vector<2x32xf32>
    %377 = arith.mulf %371, %376 : vector<2x32xf32>
    %378 = arith.truncf %377 : vector<2x32xf32> to vector<2x32xbf16>
    %cst_102 = arith.constant dense<0.000000e+00> : vector<2x128xf32>
    %379 = tpu.matmul %378, %1, %cst_102 {dimension_numbers = #tpu.dot_dimension_numbers<[1], [0], [0], [1], [0, 0, 1, 1], [], []>} : vector<2x32xbf16>, vector<32x128xbf16>, vector<2x128xf32> -> vector<2x128xf32>
    %380 = arith.truncf %342 : vector<2x32xf32> to vector<2x32xbf16>
    %cst_103 = arith.constant dense<0.000000e+00> : vector<2x128xf32>
    %381 = tpu.matmul %380, %3, %cst_103 {dimension_numbers = #tpu.dot_dimension_numbers<[1], [0], [0], [1], [0, 0, 1, 1], [], []>} : vector<2x32xbf16>, vector<32x128xbf16>, vector<2x128xf32> -> vector<2x128xf32>
    %382 = arith.addf %379, %381 : vector<2x128xf32>
    %383 = vector.broadcast %5 : vector<1x128xf32> to vector<2x128xf32>
    %384 = arith.addf %382, %383 : vector<2x128xf32>
    %385 = arith.negf %384 : vector<2x128xf32>
    %386 = math.exp %385 : vector<2x128xf32>
    %cst_104 = arith.constant 1.000000e+00 : f32
    %387 = vector.broadcast %cst_104 : f32 to vector<2x128xf32>
    %388 = arith.addf %387, %386 : vector<2x128xf32>
    %389 = arith.divf %387, %388 : vector<2x128xf32>
    %390 = math.tanh %384 : vector<2x128xf32>
    %391 = vector.extract_strided_slice %389 {offsets = [0, 0], sizes = [2, 32], strides = [1, 1]} : vector<2x128xf32> to vector<2x32xf32>
    %392 = vector.extract_strided_slice %389 {offsets = [0, 32], sizes = [2, 32], strides = [1, 1]} : vector<2x128xf32> to vector<2x32xf32>
    %393 = vector.extract_strided_slice %389 {offsets = [0, 96], sizes = [2, 32], strides = [1, 1]} : vector<2x128xf32> to vector<2x32xf32>
    %394 = vector.extract_strided_slice %390 {offsets = [0, 64], sizes = [2, 32], strides = [1, 1]} : vector<2x128xf32> to vector<2x32xf32>
    %395 = arith.mulf %392, %340 : vector<2x32xf32>
    %396 = arith.mulf %391, %394 : vector<2x32xf32>
    %397 = arith.addf %395, %396 : vector<2x32xf32>
    %398 = math.tanh %397 : vector<2x32xf32>
    %399 = arith.mulf %393, %398 : vector<2x32xf32>
    %400 = arith.negf %399 : vector<2x32xf32>
    %401 = math.exp %400 : vector<2x32xf32>
    %cst_105 = arith.constant 1.000000e+00 : f32
    %402 = vector.broadcast %cst_105 : f32 to vector<2x32xf32>
    %403 = arith.addf %402, %401 : vector<2x32xf32>
    %404 = arith.divf %402, %403 : vector<2x32xf32>
    %cst_106 = arith.constant dense<0.000000e+00> : vector<2x4xf32>
    %405 = tpu.matmul %404, %6, %cst_106 {dimension_numbers = #tpu.dot_dimension_numbers<[1], [0], [0], [1], [0, 0, 1, 1], [], []>} : vector<2x32xf32>, vector<32x4xf32>, vector<2x4xf32> -> vector<2x4xf32>
    %406 = vector.broadcast %7 : vector<1x4xf32> to vector<2x4xf32>
    %407 = arith.addf %405, %406 : vector<2x4xf32>
    %c0_107 = arith.constant 0 : index
    %c6_108 = arith.constant 6 : index
    %c0_109 = arith.constant 0 : index
    %408 = vector.load %arg9[%c0_107, %c6_108, %c0_109] : memref<2x8x4xf32, #tpu.memory_space<vmem>>, vector<2x1x4xf32>
    %409 = vector.shape_cast %408 : vector<2x1x4xf32> to vector<2x4xf32>
    %410 = vector.shape_cast %407 : vector<2x4xf32> to vector<2x1x4xf32>
    tpu.vector_store %arg9[%c0_107, %c6_108, %c0_109], %410 {strides = array<i32>} : memref<2x8x4xf32, #tpu.memory_space<vmem>>, vector<2x1x4xf32>,
    %c0_110 = arith.constant 0 : index
    %c7 = arith.constant 7 : index
    %c0_111 = arith.constant 0 : index
    %411 = vector.load %arg0[%c0_110, %c7, %c0_111] : memref<2x8x16xf32, #tpu.memory_space<vmem>>, vector<2x1x16xf32>
    %412 = vector.shape_cast %411 : vector<2x1x16xf32> to vector<2x16xf32>
    %413 = arith.truncf %412 : vector<2x16xf32> to vector<2x16xbf16>
    %cst_112 = arith.constant dense<0.000000e+00> : vector<2x128xf32>
    %414 = tpu.matmul %413, %0, %cst_112 {dimension_numbers = #tpu.dot_dimension_numbers<[1], [0], [0], [1], [0, 0, 1, 1], [], []>} : vector<2x16xbf16>, vector<16x128xbf16>, vector<2x128xf32> -> vector<2x128xf32>
    %415 = arith.truncf %377 : vector<2x32xf32> to vector<2x32xbf16>
    %cst_113 = arith.constant dense<0.000000e+00> : vector<2x128xf32>
    %416 = tpu.matmul %415, %2, %cst_113 {dimension_numbers = #tpu.dot_dimension_numbers<[1], [0], [0], [1], [0, 0, 1, 1], [], []>} : vector<2x32xbf16>, vector<32x128xbf16>, vector<2x128xf32> -> vector<2x128xf32>
    %417 = arith.addf %414, %416 : vector<2x128xf32>
    %418 = vector.broadcast %4 : vector<1x128xf32> to vector<2x128xf32>
    %419 = arith.addf %417, %418 : vector<2x128xf32>
    %420 = arith.negf %419 : vector<2x128xf32>
    %421 = math.exp %420 : vector<2x128xf32>
    %cst_114 = arith.constant 1.000000e+00 : f32
    %422 = vector.broadcast %cst_114 : f32 to vector<2x128xf32>
    %423 = arith.addf %422, %421 : vector<2x128xf32>
    %424 = arith.divf %422, %423 : vector<2x128xf32>
    %425 = math.tanh %419 : vector<2x128xf32>
    %426 = vector.extract_strided_slice %424 {offsets = [0, 0], sizes = [2, 32], strides = [1, 1]} : vector<2x128xf32> to vector<2x32xf32>
    %427 = vector.extract_strided_slice %424 {offsets = [0, 32], sizes = [2, 32], strides = [1, 1]} : vector<2x128xf32> to vector<2x32xf32>
    %428 = vector.extract_strided_slice %424 {offsets = [0, 96], sizes = [2, 32], strides = [1, 1]} : vector<2x128xf32> to vector<2x32xf32>
    %429 = vector.extract_strided_slice %425 {offsets = [0, 64], sizes = [2, 32], strides = [1, 1]} : vector<2x128xf32> to vector<2x32xf32>
    %430 = arith.mulf %427, %375 : vector<2x32xf32>
    %431 = arith.mulf %426, %429 : vector<2x32xf32>
    %432 = arith.addf %430, %431 : vector<2x32xf32>
    %433 = math.tanh %432 : vector<2x32xf32>
    %434 = arith.mulf %428, %433 : vector<2x32xf32>
    %435 = arith.truncf %434 : vector<2x32xf32> to vector<2x32xbf16>
    %cst_115 = arith.constant dense<0.000000e+00> : vector<2x128xf32>
    %436 = tpu.matmul %435, %1, %cst_115 {dimension_numbers = #tpu.dot_dimension_numbers<[1], [0], [0], [1], [0, 0, 1, 1], [], []>} : vector<2x32xbf16>, vector<32x128xbf16>, vector<2x128xf32> -> vector<2x128xf32>
    %437 = arith.truncf %399 : vector<2x32xf32> to vector<2x32xbf16>
    %cst_116 = arith.constant dense<0.000000e+00> : vector<2x128xf32>
    %438 = tpu.matmul %437, %3, %cst_116 {dimension_numbers = #tpu.dot_dimension_numbers<[1], [0], [0], [1], [0, 0, 1, 1], [], []>} : vector<2x32xbf16>, vector<32x128xbf16>, vector<2x128xf32> -> vector<2x128xf32>
    %439 = arith.addf %436, %438 : vector<2x128xf32>
    %440 = vector.broadcast %5 : vector<1x128xf32> to vector<2x128xf32>
    %441 = arith.addf %439, %440 : vector<2x128xf32>
    %442 = arith.negf %441 : vector<2x128xf32>
    %443 = math.exp %442 : vector<2x128xf32>
    %cst_117 = arith.constant 1.000000e+00 : f32
    %444 = vector.broadcast %cst_117 : f32 to vector<2x128xf32>
    %445 = arith.addf %444, %443 : vector<2x128xf32>
    %446 = arith.divf %444, %445 : vector<2x128xf32>
    %447 = math.tanh %441 : vector<2x128xf32>
    %448 = vector.extract_strided_slice %446 {offsets = [0, 0], sizes = [2, 32], strides = [1, 1]} : vector<2x128xf32> to vector<2x32xf32>
    %449 = vector.extract_strided_slice %446 {offsets = [0, 32], sizes = [2, 32], strides = [1, 1]} : vector<2x128xf32> to vector<2x32xf32>
    %450 = vector.extract_strided_slice %446 {offsets = [0, 96], sizes = [2, 32], strides = [1, 1]} : vector<2x128xf32> to vector<2x32xf32>
    %451 = vector.extract_strided_slice %447 {offsets = [0, 64], sizes = [2, 32], strides = [1, 1]} : vector<2x128xf32> to vector<2x32xf32>
    %452 = arith.mulf %449, %397 : vector<2x32xf32>
    %453 = arith.mulf %448, %451 : vector<2x32xf32>
    %454 = arith.addf %452, %453 : vector<2x32xf32>
    %455 = math.tanh %454 : vector<2x32xf32>
    %456 = arith.mulf %450, %455 : vector<2x32xf32>
    %457 = arith.negf %456 : vector<2x32xf32>
    %458 = math.exp %457 : vector<2x32xf32>
    %cst_118 = arith.constant 1.000000e+00 : f32
    %459 = vector.broadcast %cst_118 : f32 to vector<2x32xf32>
    %460 = arith.addf %459, %458 : vector<2x32xf32>
    %461 = arith.divf %459, %460 : vector<2x32xf32>
    %cst_119 = arith.constant dense<0.000000e+00> : vector<2x4xf32>
    %462 = tpu.matmul %461, %6, %cst_119 {dimension_numbers = #tpu.dot_dimension_numbers<[1], [0], [0], [1], [0, 0, 1, 1], [], []>} : vector<2x32xf32>, vector<32x4xf32>, vector<2x4xf32> -> vector<2x4xf32>
    %463 = vector.broadcast %7 : vector<1x4xf32> to vector<2x4xf32>
    %464 = arith.addf %462, %463 : vector<2x4xf32>
    %c0_120 = arith.constant 0 : index
    %c7_121 = arith.constant 7 : index
    %c0_122 = arith.constant 0 : index
    %465 = vector.load %arg9[%c0_120, %c7_121, %c0_122] : memref<2x8x4xf32, #tpu.memory_space<vmem>>, vector<2x1x4xf32>
    %466 = vector.shape_cast %465 : vector<2x1x4xf32> to vector<2x4xf32>
    %467 = vector.shape_cast %464 : vector<2x4xf32> to vector<2x1x4xf32>
    tpu.vector_store %arg9[%c0_120, %c7_121, %c0_122], %467 {strides = array<i32>} : memref<2x8x4xf32, #tpu.memory_space<vmem>>, vector<2x1x4xf32>,
    return
  }
}

</mosaic_0001>

<bundles_post_ra>
// kernel: tpu_custom_call.1
= control target key start
LH: loop header
LB: loop body
LE: loop exit
PB: predicated region body
PF: predicated region fallthrough
CT: control target
= control target key end

     0   :  { %14 = vsyncpa [#allocation3], 0  ;;  %s4496_s0 = inlined_call_operand.vmem [shape: f32[2,8,16], index: 0, kind: input, shape index: {}]   ;;  %s4497_s1 = inlined_call_operand.hbm [shape: bf16[16,128], index: 1, kind: input, shape index: {}]   ;;  %s4498_s2 = inlined_call_operand.vmem [shape: bf16[32,128], index: 2, kind: input, shape index: {}]   ;;  %s4499_s3 = inlined_call_operand.vmem [shape: f32[1,128], index: 3, kind: input, shape index: {}]   ;;  %s4500_s4 = inlined_call_operand.hbm [shape: bf16[32,128], index: 4, kind: input, shape index: {}]   ;;  %s4501_s5 = inlined_call_operand.hbm [shape: bf16[32,128], index: 5, kind: input, shape index: {}]   ;;  %s4502_s6 = inlined_call_operand.vmem [shape: f32[1,128], index: 6, kind: input, shape index: {}]   ;;  %s4503_s7 = inlined_call_operand.vmem [shape: f32[32,4], index: 7, kind: input, shape index: {}]   ;;  %s4504_s8 = inlined_call_operand.vmem [shape: f32[1,4], index: 8, kind: input, shape index: {}]   ;;  %s4505_s9 = inlined_call_operand.vmem [shape: f32[2,8,4], index: 9, kind: output, shape index: {}]  }
   0x1   :  { %15 = vsyncpa [#allocation5], 0  ;;  %s3712_s30 = smov [#allocation4]   ;;  %s3713_s11 = smov [#allocation2]  }
   0x2   :  { %s39_s10 = sshll.u32 %s3712_s30, 4  ;;  %s23_s12 = sshll.u32 %s3713_s11, 4  ;;  %s40_s10 = int_to_ptr.vmem [resolvable:$true] %s39_s10  ;;  %s24_s12 = int_to_ptr.vmem [resolvable:$true] %s23_s12 }
   0x3   :  { %s3656_s13 = scalar_lea.vmem %s40_s10, 256  ;;  %p3661_p1 = scmp.lt.s32.totalorder %s40_s10, %s40_s10 }
   0x4   :  { %p3657_p0 = scmp.ne.s32.totalorder %s40_s10, %s3656_s13  ;;  %p3662_p2 = scmp.lt.s32.totalorder %s3656_s13, %s3656_s13 }
   0x6   :  { %p3663_p3 = por %p3662_p2, %p3661_p1 }
   0x8   :  { %p3664_p4 = pnand %p3663_p3, %p3657_p0 }
   0xa   :  { %3667 = shalt.err (!%p3664_p4)
}
   0xb   :  { %s3714_s14 = smov 64   ;;  %s3715_s15 = smov 4  }
   0xc   :  { %45 = dma.hbm_to_vmem [thread:$0]  %s4500_s4, 256, %s40_s10, [#allocation5], %s3714_s14, %s3714_s14, %s3715_s15  }
   0xd   :  { %s3676_s18 = scalar_lea.vmem %s24_s12, 128  ;;  %p3681_p6 = scmp.lt.s32.totalorder %s24_s12, %s24_s12 }
   0xe   :  { %p3677_p5 = scmp.ne.s32.totalorder %s24_s12, %s3676_s18  ;;  %p3682_p7 = scmp.lt.s32.totalorder %s3676_s18, %s3676_s18 }
  0x10   :  { %p3683_p8 = por %p3682_p7, %p3681_p6 }
  0x12   :  { %p3684_p9 = pnand %p3683_p8, %p3677_p5 }
  0x14   :  { %3687 = shalt.err (!%p3684_p9)
}
  0x15   :  { %29 = dma.hbm_to_vmem [thread:$0]  %s4497_s1, 128, %s24_s12, [#allocation3], %s3714_s14, %s3714_s14, %s3715_s15  }
  0x16   :  { %s3716_s21 = smov [#allocation6]  }
  0x17   :  { %s51_s22 = sshll.u32 %s3716_s21, 4  ;;  %s52_s22 = int_to_ptr.vmem [resolvable:$true] %s51_s22 }
  0x18   :  { %s3696_s23 = scalar_lea.vmem %s52_s22, 256  ;;  %p3701_p11 = scmp.lt.s32.totalorder %s52_s22, %s52_s22 }
  0x19   :  { %p3697_p10 = scmp.ne.s32.totalorder %s52_s22, %s3696_s23  ;;  %p3702_p12 = scmp.lt.s32.totalorder %s3696_s23, %s3696_s23 }
  0x1b   :  { %p3703_p13 = por %p3702_p12, %p3701_p11 }
  0x1d   :  { %p3704_p0 = pnand %p3703_p13, %p3697_p10 }
  0x1f   :  { %3707 = shalt.err (!%p3704_p0)
}
  0x20   :  { %57 = dma.hbm_to_vmem [thread:$0]  %s4501_s5, 256, %s52_s22, [#allocation5], %s3714_s14, %s3714_s14, %s3715_s15  }
  0x21   :  { %3708 = dma.done.wait [#allocation3], 128  }
  0x22   :  { %3709 = vsyncadd [#allocation3], 4294967168 }
  0x23   :  { %3710 = dma.done.wait [#allocation5], 512  }
  0x24   :  { %3711 = vsyncadd [#allocation5], 4294966784  ;;  %v3717_v0 = vmov 0.0   ;;  %vm3718_vm0 = vmmov 0   ;;  %v3796_v1 = vld [vmem:[%s4498_s2 + $0x8] sm:$0xff]   ;;  %v3801_v2 = vld [vmem:[%s4498_s2] sm:$0xff]  }
  0x25   :  { %3129 = vmatprep.subr.bf16.mxu0 %v3717_v0  ;;  %3137 = vmatprep.subr.bf16.mxu1 %v3717_v0  ;;  %v3804_v3 = vld [vmem:[#allocation2] sm:$0xff]   ;;  %v96_v5 = vld [vmem:[%s4496_s0 + $0x8] sm:$0x1]  ;;  %vm160_vm1 = vcmask 1041409   ;;  %v3719_v11 = vmov 0   ;;  %vm169_vm2 = vcmask 130048  }
  0x26   :  { %3133 = vmatprep.mubr.msk.bf16.mxu0 %vm3718_vm0, %v3717_v0  ;;  %3139 = vmatprep.mubr.msk.bf16.mxu1 %vm3718_vm0, %v3717_v0  ;;  %v95_v4 = vld [vmem:[%s4496_s0] sm:$0x1]  ;;  %v98_v7 = vpack.c.bf16 %v96_v5, %v96_v5  ;;  %s3720_s12 = smov 32   ;;  %v3836_v36 = vld [vmem:[#allocation4 + $0x8] sm:$0xff]   ;;  %v3839_v37 = vld [vmem:[#allocation6] sm:$0xff]   ;;  %vm111_vm3 = vcmask 261120  }
  0x27   :  { %3130 = vmatpush3.bf16.msra.mxu0 %v3796_v1  ;;  %3138 = vmatpush3.bf16.msra.mxu1 %v3804_v3  ;;  %v97_v6 = vpack.c.bf16 %v95_v4, %v95_v4  ;;  %v3826_v16 = vld [vmem:[%s4499_s3] ss:$0 sm:$0xff]  ;;  %v3842_v38 = vld [vmem:[#allocation4] sm:$0xff]   ;;  %vm498_vm4 = vcmask 24576  }
  0x28   :  { %3131 = vmatprep.subr.bf16.mxu0 %v3717_v0  ;;  %3143 = vmatprep.subr.bf16.mxu1 %v3717_v0  ;;  %v158_v9 = vunpack.c.l.b16 %v98_v7  ;;  %v3834_v35 = vld [vmem:[#allocation6 + $0x8] sm:$0xff]  }
  0x29   :  { %v157_v8 = vunpack.c.l.b16 %v97_v6  ;;  %v3871_v48 = vld [vmem:[%s4502_s6] ss:$0 sm:$0xff] }
  0x2a   :  { %v159_v10 = vrot.slane %v158_v9, 7 }
  0x2b   :  { %3132 = vmatpush3.bf16.msra.mxu0 %v3801_v2 }
  0x2c   :  { %3151 = vmatprep.subr.bf16.mxu0 %v3717_v0  ;;  %v161_v12 = vsel %vm160_vm1, %v159_v10, %v157_v8  ;;  %v3885_v10 = vld [vmem:[%s4503_s7 + $0x18] sm:$0xff] }
  0x2d   :  { %v162_v13 = vpack.c.b16 %v161_v12, %v161_v12  ;;  %v3897_v12 = vld [vmem:[%s4503_s7 + $0x8] sm:$0xff] }
  0x2e   :  { %3134 = vmatmul.mubr.bf16.vlgmr.msra.gmra.mxu0 %v3719_v11 }
  0x2f   :  { %3155 = vmatprep.mubr.msk.bf16.mxu0 %vm3718_vm0, %v3717_v0  ;;  %3140 = vmatmul.mubr.msk.bf16.vlgmr.msra.gmra.mxu1 %vm169_vm2, %v162_v13  ;;  %v3904_v13 = vld [vmem:[%s4503_s7] sm:$0xff] }
  0x30   :  { %3147 = vmatprep.mubr.msk.bf16.mxu1 %vm3718_vm0, %v3717_v0  ;;  %3144 = vmatpush3.bf16.msra.mxu1 %v3834_v35 }
  0x31   :  { %3152 = vmatpush3.bf16.msra.mxu0 %v3836_v36  ;;  %3145 = vmatprep.subr.bf16.mxu1 %v3717_v0 }
  0x32   :  { %3153 = vmatprep.subr.bf16.mxu0 %v3717_v0 }
  0x34   :  { %3146 = vmatpush3.bf16.msra.mxu1 %v3839_v37 }
  0x35   :  { %3154 = vmatpush3.bf16.msra.mxu0 %v3842_v38  ;;  %3159 = vmatprep.subr.mxu1 %v3717_v0 }
  0x36   :  { %3170 = vmatprep.subr.bf16.mxu0 %v3717_v0 }
  0x37   :  { %3148 = vmatmul.mubr.bf16.vlgmr.msra.gmra.mxu1 %v3719_v11  ;;  %v3890_v11 = vld [vmem:[%s4503_s7 + $0x10] sm:$0xff] }
  0x38   :  { %3167 = vmatprep.mubr.msk.f32.mxu1 %vm3718_vm0, %v3717_v0  ;;  %3160 = vmatpush3.msra.mxu1 %v3885_v10 }
  0x39   :  { %3161 = vmatprep.subr.mxu1 %v3717_v0 }
  0x3a   :  { %3162 = vmatpush3.msra.mxu1 %v3890_v11 }
  0x3b   :  { %3163 = vmatprep.subr.mxu1 %v3717_v0 }
  0x3c   :  { %3164 = vmatpush3.msra.mxu1 %v3897_v12 }
  0x3d   :  { %3165 = vmatprep.subr.mxu1 %v3717_v0 }
  0x3e   :  { %3166 = vmatpush3.msra.mxu1 %v3904_v13 }
  0x3f   :  { %3178 = vmatprep.subr.bf16.mxu1 %v3717_v0 }
  0xee   :  { %v149_v14 = vpop.f32.mrf.mxu0 }
  0xef   :  { %v207_v17 = vpop.f32.mrf.mxu1 }
  0xf0   :  { %v3135_v15 = vpop.f32.mrf.mxu0  ;;  %v208_v19 = vadd.f32 %v207_v17, %v149_v14 }
  0xf1   :  { %v3141_v20 = vpop.f32.mrf.mxu1 }
  0xf2   :  { %v152_v18 = vpop.f32.mrf.mxu0  ;;  %v219_v22 = vadd.f32 %v3826_v16, %v208_v19 }
  0xf3   :  { %v210_v23 = vpop.f32.mrf.mxu1 }
  0xf4   :  { %v3136_v21 = vpop.f32.mrf.mxu0  ;;  %3474 = vtanh.f32 %v219_v22  ;;  %v2934_v26 = vmul.f32 -1.442695, %v219_v22  ;;  %v501_v23 = vld [vmem:[%s4496_s0 + $0x1] sm:$0x1] }
  0xf5   :  { %v3142_v24 = vpop.f32.mrf.mxu1  ;;  %v502_v21 = vld [vmem:[%s4496_s0 + $0x9] sm:$0x1] }
  0xf6   :  { %3476 = vpow2.f32 %v2934_v26  ;;  %v504_v22 = vpack.c.bf16 %v502_v21, %v502_v21  ;;  %v503_v24 = vpack.c.bf16 %v501_v23, %v501_v23 }
  0xf7   :  { %v291_v43 = vpop.f32.mrf.mxu1 }
  0xf8   :  { %v547_v26 = vunpack.c.l.b16 %v503_v24 }
  0xf9   :  { %v3149_v44 = vpop.f32.mrf.mxu1 }
  0xfb   :  { %v294_v45 = vpop.f32.mrf.mxu1 }
  0xfd   :  { %v3150_v46 = vpop.f32.mrf.mxu1 }
 0x101   :  { %v3475_v25 = vpop.eup %3474 }
 0x102   :  { %229 = vrot.lane.b32.xlu0 %v3475_v25, %s3714_s14  ;;  %v548_v25 = vunpack.c.l.b16 %v504_v22 }
 0x103   :  { %v3477_v27 = vpop.eup %3476 }
 0x104   :  { %v223_v28 = vadd.f32 1.0, %v3477_v27  ;;  %v549_v27 = vrot.slane %v548_v25, 7 }
 0x106   :  { %3478 = vrcp.f32 %v223_v28  ;;  %v550_v28 = vsel %vm160_vm1, %v549_v27, %v547_v26 }
 0x113   :  { %v3479_v29 = vpop.eup %3478 }
 0x114   :  { %v227_v32 = vmul.f32 0.0, %v3479_v29 }
 0x174   :  { %v230_v30 = vpop.permute.xlu0 %229 }
 0x175   :  { %v232_v31 = vmul.f32 %v3479_v29, %v230_v30  ;;  %v551_v30 = vpack.c.b16 %v550_v28, %v550_v28 }
 0x177   :  { %234 = vrot.lane.b32.xlu0 %v232_v31, %s3720_s12  ;;  %v3721_v31 = vmov 1966171168  }
 0x1e9   :  { %v235_v33 = vpop.permute.xlu0 %234 }
 0x1ea   :  { %v3831_v34 = vadd.f32 %v235_v33, %v227_v32  ;;  %v475_v32 = vunpack.c.l.s4 %v3721_v31  ;;  %v477_v33 = vlaneseq }
 0x1ec   :  { %3480 = vtanh.f32 %v3831_v34 }
 0x1f9   :  { %v3481_v39 = vpop.eup %3480 }
 0x1fa   :  { %240 = vrot.lane.b32.xlu1 %v3481_v39, %s3714_s14  ;;  %v476_v39 = vunpack.c.0.s8 %v475_v32 }
 0x26c   :  { %v241_v40 = vpop.permute.xlu1 %240 }
 0x26d   :  { %v243_v41 = vmul.f32 %v3479_v29, %v241_v40  ;;  %v478_v40 = vshrl.u32 %v477_v33, 7 }
 0x26f   :  { %v244_v42 = vpack.c.bf16 %v243_v41, %v243_v41  ;;  %v3936_v41 = vld [vmem:[%s4504_s8] ss:$0 sm:$0xff] }
 0x271   :  { %298 = vrot.lane.b32.xlu1 %v244_v42, %s3720_s12  ;;  %v3938_v42 = vsub.s32 %v476_v39, %v478_v40 }
 0x2e3   :  { %v299_v47 = vpop.permute.xlu1 %298 }
 0x2e4   :  { %3156 = vmatmul.mubr.msk.bf16.vlgmr.msra.gmra.mxu0 %vm111_vm3, %v299_v47 }
 0x2e5   :  { %3171 = vmatpush3.bf16.msra.mxu0 %v3796_v1  ;;  %3174 = vmatprep.mubr.msk.bf16.mxu0 %vm3718_vm0, %v3717_v0 }
 0x2e6   :  { %3172 = vmatprep.subr.bf16.mxu0 %v3717_v0 }
 0x2e9   :  { %3173 = vmatpush3.bf16.msra.mxu0 %v3801_v2 }
 0x2ea   :  { %3184 = vmatprep.subr.bf16.mxu0 %v3717_v0 }
 0x2ec   :  { %3175 = vmatmul.mubr.msk.bf16.vlgmr.msra.gmra.mxu0 %vm111_vm3, %v299_v47 }
 0x2ed   :  { %3185 = vmatpush3.bf16.msra.mxu0 %v3834_v35  ;;  %3188 = vmatprep.mubr.msk.bf16.mxu0 %vm3718_vm0, %v3717_v0 }
 0x2ee   :  { %3186 = vmatprep.subr.bf16.mxu0 %v3717_v0 }
 0x2f1   :  { %3187 = vmatpush3.bf16.msra.mxu0 %v3839_v37 }
 0x2f2   :  { %3200 = vmatprep.subr.mxu0 %v3717_v0 }
 0x3a4   :  { %v349_v49 = vpop.f32.mrf.mxu0 }
 0x3a5   :  { %v350_v50 = vadd.f32 %v349_v49, %v291_v43 }
 0x3a6   :  { %v3157_v51 = vpop.f32.mrf.mxu0 }
 0x3a7   :  { %v361_v52 = vadd.f32 %v3871_v48, %v350_v50 }
 0x3a8   :  { %v352_v53 = vpop.f32.mrf.mxu0 }
 0x3a9   :  { %3482 = vtanh.f32 %v361_v52  ;;  %v2941_v60 = vmul.f32 -1.442695, %v361_v52 }
 0x3aa   :  { %v3158_v54 = vpop.f32.mrf.mxu0 }
 0x3ab   :  { %3484 = vpow2.f32 %v2941_v60 }
 0x3ac   :  { %v3874_v55 = vpop.f32.mrf.mxu0 }
 0x3ae   :  { %v3176_v56 = vpop.f32.mrf.mxu0 }
 0x3b0   :  { %v542_v57 = vpop.f32.mrf.mxu0 }
 0x3b2   :  { %v3177_v58 = vpop.f32.mrf.mxu0 }
 0x3b6   :  { %v3483_v59 = vpop.eup %3482 }
 0x3b7   :  { %371 = vrot.lane.b32.xlu0 %v3483_v59, %s3714_s14 }
 0x3b8   :  { %v3485_v61 = vpop.eup %3484 }
 0x3b9   :  { %v365_v62 = vadd.f32 1.0, %v3485_v61 }
 0x3bb   :  { %3486 = vrcp.f32 %v365_v62 }
 0x3c8   :  { %v3487_v63 = vpop.eup %3486 }
 0x3c9   :  { %v369_v6 = vmul.f32 0.0, %v3487_v63 }
 0x429   :  { %v372_v4 = vpop.permute.xlu0 %371 }
 0x42a   :  { %v374_v5 = vmul.f32 %v3487_v63, %v372_v4 }
 0x42c   :  { %376 = vrot.lane.b32.xlu1 %v374_v5, %s3720_s12 }
 0x49e   :  { %v377_v7 = vpop.permute.xlu1 %376 }
 0x49f   :  { %v3878_v8 = vadd.f32 %v377_v7, %v369_v6 }
 0x4a1   :  { %3488 = vtanh.f32 %v3878_v8 }
 0x4ae   :  { %v3489_v9 = vpop.eup %3488 }
 0x4af   :  { %382 = vrot.lane.b32.xlu0 %v3489_v9, %s3714_s14 }
 0x521   :  { %v383_v14 = vpop.permute.xlu0 %382 }
 0x522   :  { %v3910_v15 = vmul.f32 %v3487_v63, %v383_v14 }
 0x524   :  { %v2942_v17 = vmul.f32 -1.442695, %v3910_v15  ;;  %v621_v4 = vpack.c.bf16 %v3910_v15, %v3910_v15 }
 0x526   :  { %3490 = vpow2.f32 %v2942_v17 }
 0x533   :  { %v3491_v18 = vpop.eup %3490 }
 0x534   :  { %v389_v19 = vadd.f32 1.0, %v3491_v18 }
 0x536   :  { %3492 = vrcp.f32 %v389_v19 }
 0x543   :  { %v3493_v20 = vpop.eup %3492 }
 0x544   :  { %399 = vrot.lane.b32.xlu1 %v3493_v20, %s3720_s12 }
 0x5b6   :  { %v400_v29 = vpop.permute.xlu1 %399 }
 0x5b7   :  { %3168 = vmatmul.mubr.msk.f32.vlgmr.msra.gmra.mxu1 %vm111_vm3, %v400_v29 }
 0x5b8   :  { %3179 = vmatpush3.bf16.msra.mxu1 %v3804_v3  ;;  %3180 = vmatprep.mubr.msk.bf16.mxu1 %vm3718_vm0, %v3717_v0 }
 0x5b9   :  { %3192 = vmatprep.subr.bf16.mxu1 %v3717_v0 }
 0x5bb   :  { %3181 = vmatmul.mubr.msk.bf16.vlgmr.msra.gmra.mxu1 %vm169_vm2, %v551_v30 }
 0x5bc   :  { %3193 = vmatpush3.bf16.msra.mxu1 %v3836_v36  ;;  %3196 = vmatprep.mubr.msk.bf16.mxu1 %vm3718_vm0, %v3717_v0 }
 0x5bd   :  { %3194 = vmatprep.subr.bf16.mxu1 %v3717_v0 }
 0x5c0   :  { %3195 = vmatpush3.bf16.msra.mxu1 %v3842_v38 }
 0x5c1   :  { %3211 = vmatprep.subr.bf16.mxu1 %v3717_v0 }
 0x677   :  { %v469_v43 = vpop.f32.mrf.mxu1 }
 0x678   :  { %v470_v44 = vadd.f32 %v3936_v41, %v469_v43 }
 0x679   :  { %v3169_v45 = vpop.f32.mrf.mxu1 }
 0x67a   :  { %v480_v46 = vrot.slane %v470_v44, %v3938_v42 }
 0x67b   :  { %v589_v47 = vpop.f32.mrf.mxu1 }
 0x67c   :  { %v481_v49 = vcombine.high %v480_v46, %v480_v46  ;;  %v488_v50 = vrot.slane %v480_v46, %v3938_v42  ;;  %v590_v51 = vadd.f32 %v589_v47, %v3874_v55 }
 0x67d   :  { %v3182_v52 = vpop.f32.mrf.mxu1 }
 0x67e   :  { %v495_v53 = vrot.slane %v481_v49, %v3938_v42  ;;  %499 = vst.msk [vmem:[%s4505_s9] sm:$0x1] %vm498_vm4, %v488_v50  ;;  %v595_v54 = vadd.f32 %v3826_v16, %v590_v51 }
 0x67f   :  { %v592_v56 = vpop.f32.mrf.mxu1 }
 0x680   :  { %500 = vst.msk [vmem:[%s4505_s9 + $0x8] sm:$0x1] %vm498_vm4, %v495_v53  ;;  %3494 = vtanh.f32 %v595_v54  ;;  %v2947_v55 = vmul.f32 -1.442695, %v595_v54 }
 0x681   :  { %v3183_v57 = vpop.f32.mrf.mxu1 }
 0x682   :  { %3496 = vpow2.f32 %v2947_v55 }
 0x68d   :  { %v3495_v58 = vpop.eup %3494 }
 0x68e   :  { %605 = vrot.lane.b32.xlu0 %v3495_v58, %s3714_s14 }
 0x68f   :  { %v3497_v59 = vpop.eup %3496 }
 0x690   :  { %v599_v60 = vadd.f32 1.0, %v3497_v59  ;;  %v847_v59 = vld [vmem:[%s4496_s0 + $0x2] sm:$0x1] }
 0x692   :  { %3498 = vrcp.f32 %v599_v60  ;;  %v849_v60 = vpack.c.bf16 %v847_v59, %v847_v59 }
 0x69f   :  { %v3499_v61 = vpop.eup %3498 }
 0x6a0   :  { %v603_v5 = vmul.f32 %v3499_v61, %v3831_v34 }
 0x700   :  { %v606_v62 = vpop.permute.xlu0 %605 }
 0x701   :  { %v608_v63 = vmul.f32 %v3499_v61, %v606_v62  ;;  %v893_v62 = vunpack.c.l.b16 %v849_v60 }
 0x703   :  { %610 = vrot.lane.b32.xlu1 %v608_v63, %s3720_s12 }
 0x707   :  { %623 = vrot.lane.b32.xlu1 %v621_v4, %s3720_s12 }
 0x775   :  { %v611_v6 = vpop.permute.xlu1 %610 }
 0x776   :  { %v3960_v7 = vadd.f32 %v611_v6, %v603_v5 }
 0x778   :  { %3500 = vtanh.f32 %v3960_v7 }
 0x779   :  { %v624_v9 = vpop.permute.xlu1 %623 }
 0x77a   :  { %3189 = vmatmul.mubr.msk.bf16.vlgmr.msra.gmra.mxu0 %vm111_vm3, %v624_v9 }
 0x77b   :  { %3201 = vmatpush3.msra.mxu0 %v3885_v10  ;;  %3208 = vmatprep.mubr.msk.f32.mxu0 %vm3718_vm0, %v3717_v0 }
 0x77c   :  { %3202 = vmatprep.subr.mxu0 %v3717_v0 }
 0x77d   :  { %3203 = vmatpush3.msra.mxu0 %v3890_v11 }
 0x77e   :  { %3204 = vmatprep.subr.mxu0 %v3717_v0 }
 0x77f   :  { %3205 = vmatpush3.msra.mxu0 %v3897_v12 }
 0x780   :  { %3206 = vmatprep.subr.mxu0 %v3717_v0 }
 0x781   :  { %3207 = vmatpush3.msra.mxu0 %v3904_v13 }
 0x782   :  { %3219 = vmatprep.subr.bf16.mxu0 %v3717_v0 }
 0x785   :  { %v3501_v34 = vpop.eup %3500 }
 0x786   :  { %616 = vrot.lane.b32.xlu0 %v3501_v34, %s3714_s14 }
 0x7f8   :  { %v617_v14 = vpop.permute.xlu0 %616 }
 0x7f9   :  { %v619_v15 = vmul.f32 %v3499_v61, %v617_v14 }
 0x7fb   :  { %v620_v17 = vpack.c.bf16 %v619_v15, %v619_v15 }
 0x7fd   :  { %669 = vrot.lane.b32.xlu0 %v620_v17, %s3720_s12 }
 0x83a   :  { %v662_v18 = vpop.f32.mrf.mxu0 }
 0x83c   :  { %v3190_v19 = vpop.f32.mrf.mxu0 }
 0x83e   :  { %v665_v20 = vpop.f32.mrf.mxu0 }
 0x840   :  { %v3191_v21 = vpop.f32.mrf.mxu0 }
 0x86f   :  { %v670_v22 = vpop.permute.xlu0 %669 }
 0x870   :  { %3197 = vmatmul.mubr.msk.bf16.vlgmr.msra.gmra.mxu1 %vm111_vm3, %v670_v22 }
 0x871   :  { %3212 = vmatpush3.bf16.msra.mxu1 %v3796_v1  ;;  %3215 = vmatprep.mubr.msk.bf16.mxu1 %vm3718_vm0, %v3717_v0 }
 0x872   :  { %3213 = vmatprep.subr.bf16.mxu1 %v3717_v0 }
 0x875   :  { %3214 = vmatpush3.bf16.msra.mxu1 %v3801_v2 }
 0x876   :  { %3225 = vmatprep.subr.bf16.mxu1 %v3717_v0 }
 0x878   :  { %3216 = vmatmul.mubr.msk.bf16.vlgmr.msra.gmra.mxu1 %vm111_vm3, %v670_v22 }
 0x879   :  { %3226 = vmatpush3.bf16.msra.mxu1 %v3834_v35  ;;  %3229 = vmatprep.mubr.msk.bf16.mxu1 %vm3718_vm0, %v3717_v0 }
 0x87a   :  { %3227 = vmatprep.subr.bf16.mxu1 %v3717_v0 }
 0x87d   :  { %3228 = vmatpush3.bf16.msra.mxu1 %v3839_v37 }
 0x87e   :  { %3241 = vmatprep.subr.mxu1 %v3717_v0 }
 0x930   :  { %v708_v23 = vpop.f32.mrf.mxu1 }
 0x931   :  { %v709_v24 = vadd.f32 %v708_v23, %v662_v18 }
 0x932   :  { %v3198_v25 = vpop.f32.mrf.mxu1 }
 0x933   :  { %v714_v26 = vadd.f32 %v3871_v48, %v709_v24 }
 0x934   :  { %v711_v27 = vpop.f32.mrf.mxu1 }
 0x935   :  { %3502 = vtanh.f32 %v714_v26  ;;  %v2950_v39 = vmul.f32 -1.442695, %v714_v26 }
 0x936   :  { %v3199_v28 = vpop.f32.mrf.mxu1 }
 0x937   :  { %3504 = vpow2.f32 %v2950_v39 }
 0x938   :  { %v885_v29 = vpop.f32.mrf.mxu1 }
 0x93a   :  { %v3217_v30 = vpop.f32.mrf.mxu1 }
 0x93c   :  { %v888_v31 = vpop.f32.mrf.mxu1 }
 0x93e   :  { %v3218_v32 = vpop.f32.mrf.mxu1 }
 0x942   :  { %v3503_v33 = vpop.eup %3502 }
 0x943   :  { %724 = vrot.lane.b32.xlu1 %v3503_v33, %s3714_s14 }
 0x944   :  { %v3505_v40 = vpop.eup %3504 }
 0x945   :  { %v718_v43 = vadd.f32 1.0, %v3505_v40 }
 0x947   :  { %3506 = vrcp.f32 %v718_v43 }
 0x954   :  { %v3507_v44 = vpop.eup %3506 }
 0x955   :  { %v722_v47 = vmul.f32 %v3507_v44, %v3878_v8  ;;  %v848_v8 = vld [vmem:[%s4496_s0 + $0xa] sm:$0x1] }
 0x956   :  { %v850_v55 = vpack.c.bf16 %v848_v8, %v848_v8 }
 0x958   :  { %v894_v61 = vunpack.c.l.b16 %v850_v55 }
 0x95a   :  { %v895_v63 = vrot.slane %v894_v61, 7 }
 0x95c   :  { %v896_v4 = vsel %vm160_vm1, %v895_v63, %v893_v62 }
 0x95d   :  { %v897_v6 = vpack.c.b16 %v896_v4, %v896_v4 }
 0x9b5   :  { %v725_v45 = vpop.permute.xlu1 %724 }
 0x9b6   :  { %v727_v46 = vmul.f32 %v3507_v44, %v725_v45 }
 0x9b8   :  { %729 = vrot.lane.b32.xlu0 %v727_v46, %s3720_s12 }
 0xa2a   :  { %v730_v49 = vpop.permute.xlu0 %729 }
 0xa2b   :  { %v3994_v50 = vadd.f32 %v730_v49, %v722_v47 }
 0xa2d   :  { %3508 = vtanh.f32 %v3994_v50 }
 0xa3a   :  { %v3509_v51 = vpop.eup %3508 }
 0xa3b   :  { %735 = vrot.lane.b32.xlu1 %v3509_v51, %s3714_s14 }
 0xaad   :  { %v736_v52 = vpop.permute.xlu1 %735 }
 0xaae   :  { %v738_v53 = vmul.f32 %v3507_v44, %v736_v52 }
 0xab0   :  { %v2951_v54 = vmul.f32 -1.442695, %v738_v53  ;;  %v967_v33 = vpack.c.bf16 %v738_v53, %v738_v53 }
 0xab2   :  { %3510 = vpow2.f32 %v2951_v54 }
 0xabf   :  { %v3511_v56 = vpop.eup %3510 }
 0xac0   :  { %v742_v57 = vadd.f32 1.0, %v3511_v56 }
 0xac2   :  { %3512 = vrcp.f32 %v742_v57 }
 0xacf   :  { %v3513_v58 = vpop.eup %3512 }
 0xad0   :  { %746 = vrot.lane.b32.xlu0 %v3513_v58, %s3720_s12 }
 0xb42   :  { %v747_v5 = vpop.permute.xlu0 %746 }
 0xb43   :  { %3209 = vmatmul.mubr.msk.f32.vlgmr.msra.gmra.mxu0 %vm111_vm3, %v747_v5 }
 0xb44   :  { %3220 = vmatpush3.bf16.msra.mxu0 %v3804_v3  ;;  %3221 = vmatprep.mubr.msk.bf16.mxu0 %vm3718_vm0, %v3717_v0 }
 0xb45   :  { %3233 = vmatprep.subr.bf16.mxu0 %v3717_v0 }
 0xb47   :  { %3222 = vmatmul.mubr.msk.bf16.vlgmr.msra.gmra.mxu0 %vm169_vm2, %v897_v6 }
 0xb48   :  { %3234 = vmatpush3.bf16.msra.mxu0 %v3836_v36  ;;  %3237 = vmatprep.mubr.msk.bf16.mxu0 %vm3718_vm0, %v3717_v0 }
 0xb49   :  { %3235 = vmatprep.subr.bf16.mxu0 %v3717_v0 }
 0xb4c   :  { %3236 = vmatpush3.bf16.msra.mxu0 %v3842_v38 }
 0xb4d   :  { %3252 = vmatprep.subr.bf16.mxu0 %v3717_v0 }
 0xc03   :  { %v816_v9 = vpop.f32.mrf.mxu0 }
 0xc04   :  { %v817_v34 = vadd.f32 %v3936_v41, %v816_v9 }
 0xc05   :  { %v3210_v14 = vpop.f32.mrf.mxu0 }
 0xc06   :  { %v827_v15 = vrot.slane %v817_v34, %v3938_v42 }
 0xc07   :  { %v935_v17 = vpop.f32.mrf.mxu0 }
 0xc08   :  { %v828_v18 = vcombine.high %v827_v15, %v827_v15  ;;  %v835_v19 = vrot.slane %v827_v15, %v3938_v42  ;;  %v936_v20 = vadd.f32 %v935_v17, %v885_v29 }
 0xc09   :  { %v3223_v21 = vpop.f32.mrf.mxu0 }
 0xc0a   :  { %v842_v22 = vrot.slane %v828_v18, %v3938_v42  ;;  %845 = vst.msk [vmem:[%s4505_s9 + $0x1] sm:$0x1] %vm498_vm4, %v835_v19  ;;  %v941_v23 = vadd.f32 %v3826_v16, %v936_v20 }
 0xc0b   :  { %v938_v24 = vpop.f32.mrf.mxu0 }
 0xc0c   :  { %846 = vst.msk [vmem:[%s4505_s9 + $0x9] sm:$0x1] %vm498_vm4, %v842_v22  ;;  %3514 = vtanh.f32 %v941_v23  ;;  %v2955_v27 = vmul.f32 -1.442695, %v941_v23 }
 0xc0d   :  { %v3224_v25 = vpop.f32.mrf.mxu0 }
 0xc0e   :  { %3516 = vpow2.f32 %v2955_v27 }
 0xc19   :  { %v3515_v26 = vpop.eup %3514 }
 0xc1a   :  { %951 = vrot.lane.b32.xlu1 %v3515_v26, %s3714_s14 }
 0xc1b   :  { %v3517_v28 = vpop.eup %3516 }
 0xc1c   :  { %v945_v29 = vadd.f32 1.0, %v3517_v28  ;;  %v1193_v28 = vld [vmem:[%s4496_s0 + $0x3] sm:$0x1] }
 0xc1e   :  { %3518 = vrcp.f32 %v945_v29  ;;  %v1195_v29 = vpack.c.bf16 %v1193_v28, %v1193_v28 }
 0xc2b   :  { %v3519_v30 = vpop.eup %3518 }
 0xc2c   :  { %v949_v39 = vmul.f32 %v3519_v30, %v3960_v7 }
 0xc8c   :  { %v952_v31 = vpop.permute.xlu1 %951 }
 0xc8d   :  { %v954_v32 = vmul.f32 %v3519_v30, %v952_v31  ;;  %v1239_v31 = vunpack.c.l.b16 %v1195_v29 }
 0xc8f   :  { %956 = vrot.lane.b32.xlu0 %v954_v32, %s3720_s12 }
 0xc93   :  { %969 = vrot.lane.b32.xlu0 %v967_v33, %s3720_s12 }
 0xd01   :  { %v957_v40 = vpop.permute.xlu0 %956 }
 0xd02   :  { %v4035_v43 = vadd.f32 %v957_v40, %v949_v39 }
 0xd04   :  { %3520 = vtanh.f32 %v4035_v43 }
 0xd05   :  { %v970_v44 = vpop.permute.xlu0 %969 }
 0xd06   :  { %3230 = vmatmul.mubr.msk.bf16.vlgmr.msra.gmra.mxu1 %vm111_vm3, %v970_v44 }
 0xd07   :  { %3242 = vmatpush3.msra.mxu1 %v3885_v10  ;;  %3249 = vmatprep.mubr.msk.f32.mxu1 %vm3718_vm0, %v3717_v0 }
 0xd08   :  { %3243 = vmatprep.subr.mxu1 %v3717_v0 }
 0xd09   :  { %3244 = vmatpush3.msra.mxu1 %v3890_v11 }
 0xd0a   :  { %3245 = vmatprep.subr.mxu1 %v3717_v0 }
 0xd0b   :  { %3246 = vmatpush3.msra.mxu1 %v3897_v12 }
 0xd0c   :  { %3247 = vmatprep.subr.mxu1 %v3717_v0 }
 0xd0d   :  { %3248 = vmatpush3.msra.mxu1 %v3904_v13 }
 0xd0e   :  { %3260 = vmatprep.subr.bf16.mxu1 %v3717_v0 }
 0xd11   :  { %v3521_v7 = vpop.eup %3520 }
 0xd12   :  { %962 = vrot.lane.b32.xlu1 %v3521_v7, %s3714_s14 }
 0xd84   :  { %v963_v45 = vpop.permute.xlu1 %962 }
 0xd85   :  { %v965_v46 = vmul.f32 %v3519_v30, %v963_v45 }
 0xd87   :  { %v966_v47 = vpack.c.bf16 %v965_v46, %v965_v46 }
 0xd89   :  { %1015 = vrot.lane.b32.xlu1 %v966_v47, %s3720_s12 }
 0xdc6   :  { %v1008_v49 = vpop.f32.mrf.mxu1 }
 0xdc8   :  { %v3231_v51 = vpop.f32.mrf.mxu1 }
 0xdca   :  { %v1011_v52 = vpop.f32.mrf.mxu1 }
 0xdcc   :  { %v3232_v53 = vpop.f32.mrf.mxu1 }
 0xdfb   :  { %v1016_v54 = vpop.permute.xlu1 %1015 }
 0xdfc   :  { %3238 = vmatmul.mubr.msk.bf16.vlgmr.msra.gmra.mxu0 %vm111_vm3, %v1016_v54 }
 0xdfd   :  { %3253 = vmatpush3.bf16.msra.mxu0 %v3796_v1  ;;  %3256 = vmatprep.mubr.msk.bf16.mxu0 %vm3718_vm0, %v3717_v0 }
 0xdfe   :  { %3254 = vmatprep.subr.bf16.mxu0 %v3717_v0 }
 0xe01   :  { %3255 = vmatpush3.bf16.msra.mxu0 %v3801_v2 }
 0xe02   :  { %3266 = vmatprep.subr.bf16.mxu0 %v3717_v0 }
 0xe04   :  { %3257 = vmatmul.mubr.msk.bf16.vlgmr.msra.gmra.mxu0 %vm111_vm3, %v1016_v54 }
 0xe05   :  { %3267 = vmatpush3.bf16.msra.mxu0 %v3834_v35  ;;  %3270 = vmatprep.mubr.msk.bf16.mxu0 %vm3718_vm0, %v3717_v0 }
 0xe06   :  { %3268 = vmatprep.subr.bf16.mxu0 %v3717_v0 }
 0xe09   :  { %3269 = vmatpush3.bf16.msra.mxu0 %v3839_v37 }
 0xe0a   :  { %3282 = vmatprep.subr.mxu0 %v3717_v0 }
 0xebc   :  { %v1054_v56 = vpop.f32.mrf.mxu0 }
 0xebd   :  { %v1055_v57 = vadd.f32 %v1054_v56, %v1008_v49 }
 0xebe   :  { %v3239_v58 = vpop.f32.mrf.mxu0 }
 0xebf   :  { %v1060_v8 = vadd.f32 %v3871_v48, %v1055_v57 }
 0xec0   :  { %v1057_v55 = vpop.f32.mrf.mxu0 }
 0xec1   :  { %3522 = vtanh.f32 %v1060_v8  ;;  %v2958_v5 = vmul.f32 -1.442695, %v1060_v8 }
 0xec2   :  { %v3240_v59 = vpop.f32.mrf.mxu0 }
 0xec3   :  { %3524 = vpow2.f32 %v2958_v5 }
 0xec4   :  { %v1231_v60 = vpop.f32.mrf.mxu0 }
 0xec6   :  { %v3258_v61 = vpop.f32.mrf.mxu0 }
 0xec8   :  { %v1234_v62 = vpop.f32.mrf.mxu0 }
 0xeca   :  { %v3259_v63 = vpop.f32.mrf.mxu0 }
 0xece   :  { %v3523_v4 = vpop.eup %3522 }
 0xecf   :  { %1070 = vrot.lane.b32.xlu0 %v3523_v4, %s3714_s14 }
 0xed0   :  { %v3525_v6 = vpop.eup %3524 }
 0xed1   :  { %v1064_v9 = vadd.f32 1.0, %v3525_v6 }
 0xed3   :  { %3526 = vrcp.f32 %v1064_v9 }
 0xee0   :  { %v3527_v34 = vpop.eup %3526 }
 0xee1   :  { %v1068_v17 = vmul.f32 %v3527_v34, %v3994_v50  ;;  %v1194_v50 = vld [vmem:[%s4496_s0 + $0xb] sm:$0x1] }
 0xee2   :  { %v1196_v27 = vpack.c.bf16 %v1194_v50, %v1194_v50 }
 0xee4   :  { %v1240_v30 = vunpack.c.l.b16 %v1196_v27 }
 0xee6   :  { %v1241_v32 = vrot.slane %v1240_v30, 7 }
 0xee8   :  { %v1242_v33 = vsel %vm160_vm1, %v1241_v32, %v1239_v31 }
 0xee9   :  { %v1243_v40 = vpack.c.b16 %v1242_v33, %v1242_v33 }
 0xf41   :  { %v1071_v14 = vpop.permute.xlu0 %1070 }
 0xf42   :  { %v1073_v15 = vmul.f32 %v3527_v34, %v1071_v14 }
 0xf44   :  { %1075 = vrot.lane.b32.xlu1 %v1073_v15, %s3720_s12 }
 0xfb6   :  { %v1076_v18 = vpop.permute.xlu1 %1075 }
 0xfb7   :  { %v4069_v19 = vadd.f32 %v1076_v18, %v1068_v17 }
 0xfb9   :  { %3528 = vtanh.f32 %v4069_v19 }
 0xfc6   :  { %v3529_v20 = vpop.eup %3528 }
 0xfc7   :  { %1081 = vrot.lane.b32.xlu0 %v3529_v20, %s3714_s14 }
0x1039   :  { %v1082_v21 = vpop.permute.xlu0 %1081 }
0x103a   :  { %v1084_v22 = vmul.f32 %v3527_v34, %v1082_v21 }
0x103c   :  { %v2959_v23 = vmul.f32 -1.442695, %v1084_v22 }
0x103e   :  { %3530 = vpow2.f32 %v2959_v23 }
0x104b   :  { %v3531_v24 = vpop.eup %3530 }
0x104c   :  { %v1088_v25 = vadd.f32 1.0, %v3531_v24 }
0x104e   :  { %3532 = vrcp.f32 %v1088_v25 }
0x105b   :  { %v3533_v26 = vpop.eup %3532 }
0x105c   :  { %1092 = vrot.lane.b32.xlu1 %v3533_v26, %s3720_s12 }
0x10ce   :  { %v1093_v39 = vpop.permute.xlu1 %1092 }
0x10cf   :  { %3250 = vmatmul.mubr.msk.f32.vlgmr.msra.gmra.mxu1 %vm111_vm3, %v1093_v39 }
0x10d0   :  { %3261 = vmatpush3.bf16.msra.mxu1 %v3804_v3  ;;  %3262 = vmatprep.mubr.msk.bf16.mxu1 %vm3718_vm0, %v3717_v0 }
0x10d1   :  { %3274 = vmatprep.subr.bf16.mxu1 %v3717_v0 }
0x10d3   :  { %3263 = vmatmul.mubr.msk.bf16.vlgmr.msra.gmra.mxu1 %vm169_vm2, %v1243_v40 }
0x10d4   :  { %3275 = vmatpush3.bf16.msra.mxu1 %v3836_v36  ;;  %3278 = vmatprep.mubr.msk.bf16.mxu1 %vm3718_vm0, %v3717_v0 }
0x10d5   :  { %3276 = vmatprep.subr.bf16.mxu1 %v3717_v0 }
0x10d8   :  { %3277 = vmatpush3.bf16.msra.mxu1 %v3842_v38 }
0x10d9   :  { %3293 = vmatprep.subr.bf16.mxu1 %v3717_v0 }
0x118f   :  { %v1162_v44 = vpop.f32.mrf.mxu1 }
0x1190   :  { %v1163_v3 = vadd.f32 %v3936_v41, %v1162_v44 }
0x1191   :  { %v3251_v7 = vpop.f32.mrf.mxu1 }
0x1192   :  { %v1173_v45 = vrot.slane %v1163_v3, %v3938_v42 }
0x1193   :  { %v1281_v46 = vpop.f32.mrf.mxu1 }
0x1194   :  { %v1174_v47 = vcombine.high %v1173_v45, %v1173_v45  ;;  %v1181_v49 = vrot.slane %v1173_v45, %v3938_v42  ;;  %v1282_v51 = vadd.f32 %v1281_v46, %v1231_v60 }
0x1195   :  { %v3264_v52 = vpop.f32.mrf.mxu1 }
0x1196   :  { %v1188_v53 = vrot.slane %v1174_v47, %v3938_v42  ;;  %1191 = vst.msk [vmem:[%s4505_s9 + $0x2] sm:$0x1] %vm498_vm4, %v1181_v49  ;;  %v1287_v54 = vadd.f32 %v3826_v16, %v1282_v51  ;;  %v1313_v16 = vpack.c.bf16 %v1084_v22, %v1084_v22  ;;  %v1539_v52 = vld [vmem:[%s4496_s0 + $0x4] sm:$0x1] }
0x1197   :  { %v1284_v56 = vpop.f32.mrf.mxu1 }
0x1198   :  { %1192 = vst.msk [vmem:[%s4505_s9 + $0xa] sm:$0x1] %vm498_vm4, %v1188_v53  ;;  %3534 = vtanh.f32 %v1287_v54  ;;  %v2963_v8 = vmul.f32 -1.442695, %v1287_v54  ;;  %v1541_v53 = vpack.c.bf16 %v1539_v52, %v1539_v52 }
0x1199   :  { %v3265_v57 = vpop.f32.mrf.mxu1 }
0x119a   :  { %3536 = vpow2.f32 %v2963_v8  ;;  %v1585_v56 = vunpack.c.l.b16 %v1541_v53 }
0x11a5   :  { %v3535_v58 = vpop.eup %3534 }
0x11a6   :  { %1297 = vrot.lane.b32.xlu0 %v3535_v58, %s3714_s14 }
0x11a7   :  { %v3537_v55 = vpop.eup %3536 }
0x11a8   :  { %v1291_v59 = vadd.f32 1.0, %v3537_v55 }
0x11aa   :  { %3538 = vrcp.f32 %v1291_v59  ;;  %v4157_v59 = vld [vmem:[#allocation2] sm:$0xff]  }
0x11b7   :  { %v3539_v60 = vpop.eup %3538 }
0x11b8   :  { %v1295_v63 = vmul.f32 %v3539_v60, %v4035_v43 }
0x1218   :  { %v1298_v61 = vpop.permute.xlu0 %1297 }
0x1219   :  { %v1300_v62 = vmul.f32 %v3539_v60, %v1298_v61 }
0x121b   :  { %1302 = vrot.lane.b32.xlu1 %v1300_v62, %s3720_s12 }
0x121f   :  { %1315 = vrot.lane.b32.xlu1 %v1313_v16, %s3720_s12 }
0x128d   :  { %v1303_v4 = vpop.permute.xlu1 %1302 }
0x128e   :  { %v4110_v5 = vadd.f32 %v1303_v4, %v1295_v63 }
0x1290   :  { %3540 = vtanh.f32 %v4110_v5 }
0x1291   :  { %v1316_v6 = vpop.permute.xlu1 %1315 }
0x1292   :  { %3271 = vmatmul.mubr.msk.bf16.vlgmr.msra.gmra.mxu0 %vm111_vm3, %v1316_v6 }
0x1293   :  { %3283 = vmatpush3.msra.mxu0 %v3885_v10  ;;  %3290 = vmatprep.mubr.msk.f32.mxu0 %vm3718_vm0, %v3717_v0 }
0x1294   :  { %3284 = vmatprep.subr.mxu0 %v3717_v0 }
0x1295   :  { %3285 = vmatpush3.msra.mxu0 %v3890_v11 }
0x1296   :  { %3286 = vmatprep.subr.mxu0 %v3717_v0 }
0x1297   :  { %3287 = vmatpush3.msra.mxu0 %v3897_v12 }
0x1298   :  { %3288 = vmatprep.subr.mxu0 %v3717_v0 }
0x1299   :  { %3289 = vmatpush3.msra.mxu0 %v3904_v13 }
0x129a   :  { %3301 = vmatprep.subr.bf16.mxu0 %v3717_v0 }
0x129d   :  { %v3541_v43 = vpop.eup %3540 }
0x129e   :  { %1308 = vrot.lane.b32.xlu0 %v3541_v43, %s3714_s14 }
0x1310   :  { %v1309_v9 = vpop.permute.xlu0 %1308 }
0x1311   :  { %v1311_v34 = vmul.f32 %v3539_v60, %v1309_v9 }
0x1313   :  { %v1312_v14 = vpack.c.bf16 %v1311_v34, %v1311_v34 }
0x1315   :  { %1361 = vrot.lane.b32.xlu0 %v1312_v14, %s3720_s12 }
0x1352   :  { %v1354_v15 = vpop.f32.mrf.mxu0 }
0x1354   :  { %v3272_v17 = vpop.f32.mrf.mxu0 }
0x1356   :  { %v1357_v18 = vpop.f32.mrf.mxu0 }
0x1358   :  { %v3273_v20 = vpop.f32.mrf.mxu0 }
0x1387   :  { %v1362_v21 = vpop.permute.xlu0 %1361 }
0x1388   :  { %3279 = vmatmul.mubr.msk.bf16.vlgmr.msra.gmra.mxu1 %vm111_vm3, %v1362_v21 }
0x1389   :  { %3294 = vmatpush3.bf16.msra.mxu1 %v3796_v1  ;;  %3297 = vmatprep.mubr.msk.bf16.mxu1 %vm3718_vm0, %v3717_v0 }
0x138a   :  { %3295 = vmatprep.subr.bf16.mxu1 %v3717_v0 }
0x138d   :  { %3296 = vmatpush3.bf16.msra.mxu1 %v3801_v2 }
0x138e   :  { %3307 = vmatprep.subr.bf16.mxu1 %v3717_v0 }
0x1390   :  { %3298 = vmatmul.mubr.msk.bf16.vlgmr.msra.gmra.mxu1 %vm111_vm3, %v1362_v21 }
0x1391   :  { %3308 = vmatpush3.bf16.msra.mxu1 %v3834_v35  ;;  %3311 = vmatprep.mubr.msk.bf16.mxu1 %vm3718_vm0, %v3717_v0 }
0x1392   :  { %3309 = vmatprep.subr.bf16.mxu1 %v3717_v0 }
0x1395   :  { %3310 = vmatpush3.bf16.msra.mxu1 %v3839_v37 }
0x1396   :  { %3323 = vmatprep.subr.mxu1 %v3717_v0 }
0x1448   :  { %v1400_v1 = vpop.f32.mrf.mxu1 }
0x1449   :  { %v1401_v22 = vadd.f32 %v1400_v1, %v1354_v15 }
0x144a   :  { %v3280_v23 = vpop.f32.mrf.mxu1 }
0x144b   :  { %v1406_v2 = vadd.f32 %v3871_v48, %v1401_v22 }
0x144c   :  { %v1403_v24 = vpop.f32.mrf.mxu1 }
0x144d   :  { %3542 = vtanh.f32 %v1406_v2  ;;  %v2966_v29 = vmul.f32 -1.442695, %v1406_v2 }
0x144e   :  { %v3281_v25 = vpop.f32.mrf.mxu1 }
0x144f   :  { %3544 = vpow2.f32 %v2966_v29 }
0x1450   :  { %v1577_v26 = vpop.f32.mrf.mxu1 }
0x1452   :  { %v3299_v50 = vpop.f32.mrf.mxu1 }
0x1454   :  { %v1580_v35 = vpop.f32.mrf.mxu1 }
0x1456   :  { %v3300_v27 = vpop.f32.mrf.mxu1 }
0x145a   :  { %v3543_v28 = vpop.eup %3542 }
0x145b   :  { %1416 = vrot.lane.b32.xlu1 %v3543_v28, %s3714_s14 }
0x145c   :  { %v3545_v37 = vpop.eup %3544 }
0x145d   :  { %v1410_v30 = vadd.f32 1.0, %v3545_v37 }
0x145f   :  { %3546 = vrcp.f32 %v1410_v30 }
0x146c   :  { %v3547_v31 = vpop.eup %3546 }
0x146d   :  { %v1414_v48 = vmul.f32 %v3547_v31, %v4069_v19  ;;  %v1540_v19 = vld [vmem:[%s4496_s0 + $0xc] sm:$0x1] }
0x146e   :  { %v1542_v51 = vpack.c.bf16 %v1540_v19, %v1540_v19 }
0x1470   :  { %v1586_v54 = vunpack.c.l.b16 %v1542_v51 }
0x1472   :  { %v1587_v57 = vrot.slane %v1586_v54, 7 }
0x1474   :  { %v1588_v58 = vsel %vm160_vm1, %v1587_v57, %v1585_v56 }
0x1475   :  { %v1589_v55 = vpack.c.b16 %v1588_v58, %v1588_v58 }
0x14cd   :  { %v1417_v32 = vpop.permute.xlu1 %1416 }
0x14ce   :  { %v1419_v33 = vmul.f32 %v3547_v31, %v1417_v32  ;;  %v4232_v32 = vld [vmem:[#allocation6] sm:$0xff]  }
0x14d0   :  { %1421 = vrot.lane.b32.xlu0 %v1419_v33, %s3720_s12 }
0x1542   :  { %v1422_v39 = vpop.permute.xlu0 %1421 }
0x1543   :  { %v4144_v40 = vadd.f32 %v1422_v39, %v1414_v48 }
0x1545   :  { %3548 = vtanh.f32 %v4144_v40 }
0x1552   :  { %v3549_v44 = vpop.eup %3548 }
0x1553   :  { %1427 = vrot.lane.b32.xlu1 %v3549_v44, %s3714_s14  ;;  %v4239_v44 = vld [vmem:[%s4502_s6] ss:$0 sm:$0xff] }
0x15c5   :  { %v1428_v3 = vpop.permute.xlu1 %1427 }
0x15c6   :  { %v1430_v7 = vmul.f32 %v3547_v31, %v1428_v3  ;;  %v4226_v31 = vld [vmem:[#allocation6 + $0x8] sm:$0xff]  }
0x15c8   :  { %v2967_v45 = vmul.f32 -1.442695, %v1430_v7  ;;  %v1659_v2 = vpack.c.bf16 %v1430_v7, %v1430_v7 }
0x15ca   :  { %3550 = vpow2.f32 %v2967_v45 }
0x15d7   :  { %v3551_v46 = vpop.eup %3550 }
0x15d8   :  { %v1434_v47 = vadd.f32 1.0, %v3551_v46 }
0x15da   :  { %3552 = vrcp.f32 %v1434_v47 }
0x15e7   :  { %v3553_v49 = vpop.eup %3552 }
0x15e8   :  { %1438 = vrot.lane.b32.xlu0 %v3553_v49, %s3720_s12 }
0x165a   :  { %v1439_v8 = vpop.permute.xlu0 %1438 }
0x165b   :  { %3291 = vmatmul.mubr.msk.f32.vlgmr.msra.gmra.mxu0 %vm111_vm3, %v1439_v8 }
0x165c   :  { %3302 = vmatpush3.bf16.msra.mxu0 %v4157_v59  ;;  %3303 = vmatprep.mubr.msk.bf16.mxu0 %vm3718_vm0, %v3717_v0 }
0x165d   :  { %3315 = vmatprep.subr.bf16.mxu0 %v3717_v0 }
0x165f   :  { %3304 = vmatmul.mubr.msk.bf16.vlgmr.msra.gmra.mxu0 %vm169_vm2, %v1589_v55 }
0x1660   :  { %3316 = vmatpush3.bf16.msra.mxu0 %v3836_v36  ;;  %3319 = vmatprep.mubr.msk.bf16.mxu0 %vm3718_vm0, %v3717_v0 }
0x1661   :  { %3317 = vmatprep.subr.bf16.mxu0 %v3717_v0 }
0x1664   :  { %3318 = vmatpush3.bf16.msra.mxu0 %v3842_v38  ;;  %v4181_v38 = vld [vmem:[%s4499_s3] ss:$0 sm:$0xff] }
0x1665   :  { %3334 = vmatprep.subr.bf16.mxu0 %v3717_v0 }
0x171b   :  { %v1508_v60 = vpop.f32.mrf.mxu0 }
0x171c   :  { %v1509_v61 = vadd.f32 %v3936_v41, %v1508_v60 }
0x171d   :  { %v3292_v62 = vpop.f32.mrf.mxu0 }
0x171e   :  { %v1519_v16 = vrot.slane %v1509_v61, %v3938_v42 }
0x171f   :  { %v1627_v63 = vpop.f32.mrf.mxu0 }
0x1720   :  { %v1520_v4 = vcombine.high %v1519_v16, %v1519_v16  ;;  %v1527_v6 = vrot.slane %v1519_v16, %v3938_v42  ;;  %v1628_v36 = vadd.f32 %v1627_v63, %v1577_v26 }
0x1721   :  { %v3305_v43 = vpop.f32.mrf.mxu0 }
0x1722   :  { %v1534_v9 = vrot.slane %v1520_v4, %v3938_v42  ;;  %1537 = vst.msk [vmem:[%s4505_s9 + $0x3] sm:$0x1] %vm498_vm4, %v1527_v6  ;;  %v1633_v34 = vadd.f32 %v4181_v38, %v1628_v36 }
0x1723   :  { %v1630_v14 = vpop.f32.mrf.mxu0 }
0x1724   :  { %1538 = vst.msk [vmem:[%s4505_s9 + $0xb] sm:$0x1] %vm498_vm4, %v1534_v9  ;;  %3554 = vtanh.f32 %v1633_v34  ;;  %v2971_v18 = vmul.f32 -1.442695, %v1633_v34  ;;  %v1885_v9 = vld [vmem:[%s4496_s0 + $0x5] sm:$0x1] }
0x1725   :  { %v3306_v15 = vpop.f32.mrf.mxu0  ;;  %v1887_v34 = vpack.c.bf16 %v1885_v9, %v1885_v9 }
0x1726   :  { %3556 = vpow2.f32 %v2971_v18 }
0x1727   :  { %v1931_v15 = vunpack.c.l.b16 %v1887_v34 }
0x1731   :  { %v3555_v17 = vpop.eup %3554 }
0x1732   :  { %1643 = vrot.lane.b32.xlu1 %v3555_v17, %s3714_s14 }
0x1733   :  { %v3557_v20 = vpop.eup %3556 }
0x1734   :  { %v1637_v21 = vadd.f32 1.0, %v3557_v20 }
0x1736   :  { %3558 = vrcp.f32 %v1637_v21 }
0x1743   :  { %v3559_v1 = vpop.eup %3558 }
0x1744   :  { %v1641_v24 = vmul.f32 %v3559_v1, %v4110_v5 }
0x17a4   :  { %v1644_v22 = vpop.permute.xlu1 %1643 }
0x17a5   :  { %v1646_v23 = vmul.f32 %v3559_v1, %v1644_v22  ;;  %v4269_v22 = vld [vmem:[#allocation4] sm:$0xff]  }
0x17a7   :  { %1648 = vrot.lane.b32.xlu0 %v1646_v23, %s3720_s12 }
0x17ab   :  { %1661 = vrot.lane.b32.xlu0 %v1659_v2, %s3720_s12 }
0x1819   :  { %v1649_v25 = vpop.permute.xlu0 %1648 }
0x181a   :  { %v4192_v26 = vadd.f32 %v1649_v25, %v1641_v24 }
0x181c   :  { %3560 = vtanh.f32 %v4192_v26 }
0x181d   :  { %v1662_v50 = vpop.permute.xlu0 %1661 }
0x181e   :  { %3312 = vmatmul.mubr.msk.bf16.vlgmr.msra.gmra.mxu1 %vm111_vm3, %v1662_v50 }
0x181f   :  { %3324 = vmatpush3.msra.mxu1 %v3885_v10  ;;  %3331 = vmatprep.mubr.msk.f32.mxu1 %vm3718_vm0, %v3717_v0 }
0x1820   :  { %3325 = vmatprep.subr.mxu1 %v3717_v0 }
0x1821   :  { %3326 = vmatpush3.msra.mxu1 %v3890_v11 }
0x1822   :  { %3327 = vmatprep.subr.mxu1 %v3717_v0 }
0x1823   :  { %3328 = vmatpush3.msra.mxu1 %v3897_v12  ;;  %v4212_v12 = vld [vmem:[%s4498_s2 + $0x8] sm:$0xff]  }
0x1824   :  { %3329 = vmatprep.subr.mxu1 %v3717_v0 }
0x1825   :  { %3330 = vmatpush3.msra.mxu1 %v3904_v13  ;;  %v4221_v13 = vld [vmem:[%s4498_s2] sm:$0xff]  }
0x1826   :  { %3342 = vmatprep.subr.bf16.mxu1 %v3717_v0 }
0x1829   :  { %v3561_v5 = vpop.eup %3560 }
0x182a   :  { %1654 = vrot.lane.b32.xlu1 %v3561_v5, %s3714_s14 }
0x189c   :  { %v1655_v10 = vpop.permute.xlu1 %1654 }
0x189d   :  { %v1657_v35 = vmul.f32 %v3559_v1, %v1655_v10  ;;  %v4263_v1 = vld [vmem:[#allocation4 + $0x8] sm:$0xff]  }
0x189f   :  { %v1658_v27 = vpack.c.bf16 %v1657_v35, %v1657_v35 }
0x18a1   :  { %1707 = vrot.lane.b32.xlu1 %v1658_v27, %s3720_s12 }
0x18de   :  { %v1700_v28 = vpop.f32.mrf.mxu1 }
0x18e0   :  { %v3313_v11 = vpop.f32.mrf.mxu1 }
0x18e2   :  { %v1703_v29 = vpop.f32.mrf.mxu1 }
0x18e4   :  { %v3314_v37 = vpop.f32.mrf.mxu1 }
0x1913   :  { %v1708_v30 = vpop.permute.xlu1 %1707 }
0x1914   :  { %3320 = vmatmul.mubr.msk.bf16.vlgmr.msra.gmra.mxu0 %vm111_vm3, %v1708_v30 }
0x1915   :  { %3335 = vmatpush3.bf16.msra.mxu0 %v4212_v12  ;;  %3338 = vmatprep.mubr.msk.bf16.mxu0 %vm3718_vm0, %v3717_v0 }
0x1916   :  { %3336 = vmatprep.subr.bf16.mxu0 %v3717_v0 }
0x1919   :  { %3337 = vmatpush3.bf16.msra.mxu0 %v4221_v13 }
0x191a   :  { %3348 = vmatprep.subr.bf16.mxu0 %v3717_v0 }
0x191c   :  { %3339 = vmatmul.mubr.msk.bf16.vlgmr.msra.gmra.mxu0 %vm111_vm3, %v1708_v30 }
0x191d   :  { %3349 = vmatpush3.bf16.msra.mxu0 %v4226_v31  ;;  %3352 = vmatprep.mubr.msk.bf16.mxu0 %vm3718_vm0, %v3717_v0 }
0x191e   :  { %3350 = vmatprep.subr.bf16.mxu0 %v3717_v0 }
0x1921   :  { %3351 = vmatpush3.bf16.msra.mxu0 %v4232_v32 }
0x1922   :  { %3364 = vmatprep.subr.mxu0 %v3717_v0 }
0x19d4   :  { %v1746_v33 = vpop.f32.mrf.mxu0 }
0x19d5   :  { %v1747_v48 = vadd.f32 %v1746_v33, %v1700_v28 }
0x19d6   :  { %v3321_v39 = vpop.f32.mrf.mxu0 }
0x19d7   :  { %v1752_v3 = vadd.f32 %v4239_v44, %v1747_v48 }
0x19d8   :  { %v1749_v7 = vpop.f32.mrf.mxu0 }
0x19d9   :  { %3562 = vtanh.f32 %v1752_v3  ;;  %v2974_v52 = vmul.f32 -1.442695, %v1752_v3 }
0x19da   :  { %v3322_v45 = vpop.f32.mrf.mxu0 }
0x19db   :  { %3564 = vpow2.f32 %v2974_v52  ;;  %v4313_v52 = vld [vmem:[%s4503_s7 + $0x8] sm:$0xff] }
0x19dc   :  { %v1923_v46 = vpop.f32.mrf.mxu0 }
0x19de   :  { %v3340_v47 = vpop.f32.mrf.mxu0 }
0x19e0   :  { %v1926_v49 = vpop.f32.mrf.mxu0 }
0x19e2   :  { %v3341_v19 = vpop.f32.mrf.mxu0 }
0x19e6   :  { %v3563_v51 = vpop.eup %3562 }
0x19e7   :  { %1762 = vrot.lane.b32.xlu0 %v3563_v51, %s3714_s14  ;;  %v4297_v51 = vld [vmem:[%s4503_s7 + $0x18] sm:$0xff] }
0x19e8   :  { %v3565_v53 = vpop.eup %3564 }
0x19e9   :  { %v1756_v54 = vadd.f32 1.0, %v3565_v53  ;;  %v4320_v53 = vld [vmem:[%s4503_s7] sm:$0xff] }
0x19eb   :  { %3566 = vrcp.f32 %v1756_v54 }
0x19f8   :  { %v3567_v56 = vpop.eup %3566 }
0x19f9   :  { %v1760_v8 = vmul.f32 %v3567_v56, %v4144_v40  ;;  %v1886_v40 = vld [vmem:[%s4496_s0 + $0xd] sm:$0x1] }
0x19fa   :  { %v1888_v43 = vpack.c.bf16 %v1886_v40, %v1886_v40 }
0x19fc   :  { %v1932_v14 = vunpack.c.l.b16 %v1888_v43 }
0x19fe   :  { %v1933_v17 = vrot.slane %v1932_v14, 7 }
0x1a00   :  { %v1934_v18 = vsel %vm160_vm1, %v1933_v17, %v1931_v15 }
0x1a01   :  { %v1935_v21 = vpack.c.b16 %v1934_v18, %v1934_v18 }
0x1a59   :  { %v1763_v57 = vpop.permute.xlu0 %1762 }
0x1a5a   :  { %v1765_v58 = vmul.f32 %v3567_v56, %v1763_v57 }
0x1a5c   :  { %1767 = vrot.lane.b32.xlu1 %v1765_v58, %s3720_s12 }
0x1ace   :  { %v1768_v55 = vpop.permute.xlu1 %1767 }
0x1acf   :  { %v4245_v60 = vadd.f32 %v1768_v55, %v1760_v8 }
0x1ad1   :  { %3568 = vtanh.f32 %v4245_v60 }
0x1ade   :  { %v3569_v61 = vpop.eup %3568 }
0x1adf   :  { %1773 = vrot.lane.b32.xlu0 %v3569_v61, %s3714_s14 }
0x1b51   :  { %v1774_v62 = vpop.permute.xlu0 %1773 }
0x1b52   :  { %v1776_v16 = vmul.f32 %v3567_v56, %v1774_v62 }
0x1b54   :  { %v2975_v63 = vmul.f32 -1.442695, %v1776_v16  ;;  %v2005_v45 = vpack.c.bf16 %v1776_v16, %v1776_v16 }
0x1b56   :  { %3570 = vpow2.f32 %v2975_v63 }
0x1b63   :  { %v3571_v4 = vpop.eup %3570 }
0x1b64   :  { %v1780_v6 = vadd.f32 1.0, %v3571_v4 }
0x1b66   :  { %3572 = vrcp.f32 %v1780_v6 }
0x1b73   :  { %v3573_v36 = vpop.eup %3572 }
0x1b74   :  { %1784 = vrot.lane.b32.xlu1 %v3573_v36, %s3720_s12 }
0x1be6   :  { %v1785_v20 = vpop.permute.xlu1 %1784 }
0x1be7   :  { %3332 = vmatmul.mubr.msk.f32.vlgmr.msra.gmra.mxu1 %vm111_vm3, %v1785_v20 }
0x1be8   :  { %3343 = vmatpush3.bf16.msra.mxu1 %v4157_v59  ;;  %3344 = vmatprep.mubr.msk.bf16.mxu1 %vm3718_vm0, %v3717_v0 }
0x1be9   :  { %3356 = vmatprep.subr.bf16.mxu1 %v3717_v0 }
0x1beb   :  { %3345 = vmatmul.mubr.msk.bf16.vlgmr.msra.gmra.mxu1 %vm169_vm2, %v1935_v21 }
0x1bec   :  { %3357 = vmatpush3.bf16.msra.mxu1 %v4263_v1  ;;  %3360 = vmatprep.mubr.msk.bf16.mxu1 %vm3718_vm0, %v3717_v0 }
0x1bed   :  { %3358 = vmatprep.subr.bf16.mxu1 %v3717_v0 }
0x1bf0   :  { %3359 = vmatpush3.bf16.msra.mxu1 %v4269_v22 }
0x1bf1   :  { %3375 = vmatprep.subr.bf16.mxu1 %v3717_v0 }
0x1ca7   :  { %v1854_v23 = vpop.f32.mrf.mxu1 }
0x1ca8   :  { %v1855_v2 = vadd.f32 %v3936_v41, %v1854_v23 }
0x1ca9   :  { %v3333_v24 = vpop.f32.mrf.mxu1 }
0x1caa   :  { %v1865_v25 = vrot.slane %v1855_v2, %v3938_v42 }
0x1cab   :  { %v1973_v50 = vpop.f32.mrf.mxu1 }
0x1cac   :  { %v1866_v5 = vcombine.high %v1865_v25, %v1865_v25  ;;  %v1873_v10 = vrot.slane %v1865_v25, %v3938_v42  ;;  %v1974_v35 = vadd.f32 %v1973_v50, %v1923_v46 }
0x1cad   :  { %v3346_v27 = vpop.f32.mrf.mxu1 }
0x1cae   :  { %v1880_v28 = vrot.slane %v1866_v5, %v3938_v42  ;;  %1883 = vst.msk [vmem:[%s4505_s9 + $0x4] sm:$0x1] %vm498_vm4, %v1873_v10  ;;  %v1979_v11 = vadd.f32 %v4181_v38, %v1974_v35 }
0x1caf   :  { %v1976_v29 = vpop.f32.mrf.mxu1 }
0x1cb0   :  { %1884 = vst.msk [vmem:[%s4505_s9 + $0xc] sm:$0x1] %vm498_vm4, %v1880_v28  ;;  %3574 = vtanh.f32 %v1979_v11  ;;  %v2979_v30 = vmul.f32 -1.442695, %v1979_v11 }
0x1cb1   :  { %v3347_v41 = vpop.f32.mrf.mxu1 }
0x1cb2   :  { %3576 = vpow2.f32 %v2979_v30  ;;  %v2231_v30 = vld [vmem:[%s4496_s0 + $0x6] sm:$0x1] }
0x1cbd   :  { %v3575_v37 = vpop.eup %3574 }
0x1cbe   :  { %1989 = vrot.lane.b32.xlu0 %v3575_v37, %s3714_s14 }
0x1cbf   :  { %v3577_v33 = vpop.eup %3576 }
0x1cc0   :  { %v1983_v48 = vadd.f32 1.0, %v3577_v33  ;;  %v2233_v33 = vpack.c.bf16 %v2231_v30, %v2231_v30 }
0x1cc2   :  { %3578 = vrcp.f32 %v1983_v48 }
0x1ccf   :  { %v3579_v39 = vpop.eup %3578 }
0x1cd0   :  { %v1987_v46 = vmul.f32 %v3579_v39, %v4192_v26  ;;  %v4306_v26 = vld [vmem:[%s4503_s7 + $0x10] sm:$0xff] }
0x1d30   :  { %v1990_v3 = vpop.permute.xlu0 %1989 }
0x1d31   :  { %v1992_v7 = vmul.f32 %v3579_v39, %v1990_v3 }
0x1d33   :  { %1994 = vrot.lane.b32.xlu1 %v1992_v7, %s3720_s12 }
0x1d37   :  { %2007 = vrot.lane.b32.xlu1 %v2005_v45, %s3720_s12 }
0x1da5   :  { %v1995_v47 = vpop.permute.xlu1 %1994 }
0x1da6   :  { %v4290_v49 = vadd.f32 %v1995_v47, %v1987_v46 }
0x1da8   :  { %3580 = vtanh.f32 %v4290_v49 }
0x1da9   :  { %v2008_v19 = vpop.permute.xlu1 %2007 }
0x1daa   :  { %3353 = vmatmul.mubr.msk.bf16.vlgmr.msra.gmra.mxu0 %vm111_vm3, %v2008_v19  ;;  %v4371_v19 = vld [vmem:[%s4504_s8] ss:$0 sm:$0xff] }
0x1dab   :  { %3365 = vmatpush3.msra.mxu0 %v4297_v51  ;;  %3372 = vmatprep.mubr.msk.f32.mxu0 %vm3718_vm0, %v3717_v0 }
0x1dac   :  { %3366 = vmatprep.subr.mxu0 %v3717_v0 }
0x1dad   :  { %3367 = vmatpush3.msra.mxu0 %v4306_v26 }
0x1dae   :  { %3368 = vmatprep.subr.mxu0 %v3717_v0 }
0x1daf   :  { %3369 = vmatpush3.msra.mxu0 %v4313_v52 }
0x1db0   :  { %3370 = vmatprep.subr.mxu0 %v3717_v0 }
0x1db1   :  { %3371 = vmatpush3.msra.mxu0 %v4320_v53 }
0x1db2   :  { %3383 = vmatprep.subr.bf16.mxu0 %v3717_v0 }
0x1db5   :  { %v3581_v54 = vpop.eup %3580 }
0x1db6   :  { %2000 = vrot.lane.b32.xlu0 %v3581_v54, %s3714_s14 }
0x1e28   :  { %v2001_v56 = vpop.permute.xlu0 %2000 }
0x1e29   :  { %v2003_v57 = vmul.f32 %v3579_v39, %v2001_v56  ;;  %v2277_v39 = vunpack.c.l.b16 %v2233_v33 }
0x1e2b   :  { %v2004_v58 = vpack.c.bf16 %v2003_v57, %v2003_v57 }
0x1e2d   :  { %2053 = vrot.lane.b32.xlu0 %v2004_v58, %s3720_s12 }
0x1e6a   :  { %v2046_v8 = vpop.f32.mrf.mxu0 }
0x1e6c   :  { %v3354_v55 = vpop.f32.mrf.mxu0 }
0x1e6e   :  { %v2049_v61 = vpop.f32.mrf.mxu0 }
0x1e70   :  { %v3355_v62 = vpop.f32.mrf.mxu0 }
0x1e9f   :  { %v2054_v16 = vpop.permute.xlu0 %2053 }
0x1ea0   :  { %3361 = vmatmul.mubr.msk.bf16.vlgmr.msra.gmra.mxu1 %vm111_vm3, %v2054_v16 }
0x1ea1   :  { %3376 = vmatpush3.bf16.msra.mxu1 %v4212_v12  ;;  %3379 = vmatprep.mubr.msk.bf16.mxu1 %vm3718_vm0, %v3717_v0 }
0x1ea2   :  { %3377 = vmatprep.subr.bf16.mxu1 %v3717_v0 }
0x1ea5   :  { %3378 = vmatpush3.bf16.msra.mxu1 %v4221_v13 }
0x1ea6   :  { %3389 = vmatprep.subr.bf16.mxu1 %v3717_v0 }
0x1ea8   :  { %3380 = vmatmul.mubr.msk.bf16.vlgmr.msra.gmra.mxu1 %vm111_vm3, %v2054_v16 }
0x1ea9   :  { %3390 = vmatpush3.bf16.msra.mxu1 %v4226_v31  ;;  %3393 = vmatprep.mubr.msk.bf16.mxu1 %vm3718_vm0, %v3717_v0 }
0x1eaa   :  { %3391 = vmatprep.subr.bf16.mxu1 %v3717_v0 }
0x1ead   :  { %3392 = vmatpush3.bf16.msra.mxu1 %v4232_v32 }
0x1eae   :  { %3405 = vmatprep.subr.mxu1 %v3717_v0 }
0x1f60   :  { %v2092_v63 = vpop.f32.mrf.mxu1 }
0x1f61   :  { %v2093_v4 = vadd.f32 %v2092_v63, %v2046_v8 }
0x1f62   :  { %v3362_v6 = vpop.f32.mrf.mxu1 }
0x1f63   :  { %v2098_v36 = vadd.f32 %v4239_v44, %v2093_v4 }
0x1f64   :  { %v2095_v40 = vpop.f32.mrf.mxu1 }
0x1f65   :  { %3582 = vtanh.f32 %v2098_v36  ;;  %v2982_v18 = vmul.f32 -1.442695, %v2098_v36 }
0x1f66   :  { %v3363_v43 = vpop.f32.mrf.mxu1 }
0x1f67   :  { %3584 = vpow2.f32 %v2982_v18 }
0x1f68   :  { %v2269_v9 = vpop.f32.mrf.mxu1 }
0x1f6a   :  { %v3381_v34 = vpop.f32.mrf.mxu1 }
0x1f6c   :  { %v2272_v14 = vpop.f32.mrf.mxu1 }
0x1f6e   :  { %v3382_v15 = vpop.f32.mrf.mxu1 }
0x1f72   :  { %v3583_v17 = vpop.eup %3582 }
0x1f73   :  { %2108 = vrot.lane.b32.xlu1 %v3583_v17, %s3714_s14 }
0x1f74   :  { %v3585_v20 = vpop.eup %3584 }
0x1f75   :  { %v2102_v21 = vadd.f32 1.0, %v3585_v20 }
0x1f77   :  { %3586 = vrcp.f32 %v2102_v21 }
0x1f84   :  { %v3587_v23 = vpop.eup %3586 }
0x1f85   :  { %v2106_v25 = vmul.f32 %v3587_v23, %v4245_v60  ;;  %v2232_v60 = vld [vmem:[%s4496_s0 + $0xe] sm:$0x1] }
0x1f86   :  { %v2234_v37 = vpack.c.bf16 %v2232_v60, %v2232_v60 }
0x1f88   :  { %v2278_v48 = vunpack.c.l.b16 %v2234_v37 }
0x1f8a   :  { %v2279_v3 = vrot.slane %v2278_v48, 7 }
0x1f8c   :  { %v2280_v7 = vsel %vm160_vm1, %v2279_v3, %v2277_v39 }
0x1f8d   :  { %v2281_v46 = vpack.c.b16 %v2280_v7, %v2280_v7 }
0x1fe5   :  { %v2109_v2 = vpop.permute.xlu1 %2108 }
0x1fe6   :  { %v2111_v24 = vmul.f32 %v3587_v23, %v2109_v2 }
0x1fe8   :  { %2113 = vrot.lane.b32.xlu0 %v2111_v24, %s3720_s12 }
0x205a   :  { %v2114_v50 = vpop.permute.xlu0 %2113 }
0x205b   :  { %v4344_v5 = vadd.f32 %v2114_v50, %v2106_v25 }
0x205d   :  { %3588 = vtanh.f32 %v4344_v5 }
0x206a   :  { %v3589_v10 = vpop.eup %3588 }
0x206b   :  { %2119 = vrot.lane.b32.xlu1 %v3589_v10, %s3714_s14 }
0x20dd   :  { %v2120_v35 = vpop.permute.xlu1 %2119 }
0x20de   :  { %v2122_v27 = vmul.f32 %v3587_v23, %v2120_v35 }
0x20e0   :  { %v2983_v28 = vmul.f32 -1.442695, %v2122_v27  ;;  %v2351_v17 = vpack.c.bf16 %v2122_v27, %v2122_v27 }
0x20e2   :  { %3590 = vpow2.f32 %v2983_v28 }
0x20ef   :  { %v3591_v11 = vpop.eup %3590 }
0x20f0   :  { %v2126_v29 = vadd.f32 1.0, %v3591_v11 }
0x20f2   :  { %3592 = vrcp.f32 %v2126_v29 }
0x20ff   :  { %v3593_v41 = vpop.eup %3592 }
0x2100   :  { %2130 = vrot.lane.b32.xlu0 %v3593_v41, %s3720_s12 }
0x2172   :  { %v2131_v45 = vpop.permute.xlu0 %2130 }
0x2173   :  { %3373 = vmatmul.mubr.msk.f32.vlgmr.msra.gmra.mxu0 %vm111_vm3, %v2131_v45 }
0x2174   :  { %3384 = vmatpush3.bf16.msra.mxu0 %v4157_v59  ;;  %3385 = vmatprep.mubr.msk.bf16.mxu0 %vm3718_vm0, %v3717_v0 }
0x2175   :  { %3397 = vmatprep.subr.bf16.mxu0 %v3717_v0 }
0x2177   :  { %3386 = vmatmul.mubr.msk.bf16.vlgmr.msra.gmra.mxu0 %vm169_vm2, %v2281_v46 }
0x2178   :  { %3398 = vmatpush3.bf16.msra.mxu0 %v4263_v1  ;;  %3401 = vmatprep.mubr.msk.bf16.mxu0 %vm3718_vm0, %v3717_v0 }
0x2179   :  { %3399 = vmatprep.subr.bf16.mxu0 %v3717_v0 }
0x217c   :  { %3400 = vmatpush3.bf16.msra.mxu0 %v4269_v22 }
0x217d   :  { %3416 = vmatprep.subr.bf16.mxu0 %v3717_v0 }
0x2233   :  { %v2200_v47 = vpop.f32.mrf.mxu0 }
0x2234   :  { %v2201_v54 = vadd.f32 %v4371_v19, %v2200_v47 }
0x2235   :  { %v3374_v56 = vpop.f32.mrf.mxu0 }
0x2236   :  { %v2211_v57 = vrot.slane %v2201_v54, %v3938_v42 }
0x2237   :  { %v2319_v58 = vpop.f32.mrf.mxu0 }
0x2238   :  { %v2212_v8 = vcombine.high %v2211_v57, %v2211_v57  ;;  %v2219_v55 = vrot.slane %v2211_v57, %v3938_v42  ;;  %v2320_v61 = vadd.f32 %v2319_v58, %v2269_v9 }
0x2239   :  { %v3387_v62 = vpop.f32.mrf.mxu0 }
0x223a   :  { %v2226_v16 = vrot.slane %v2212_v8, %v3938_v42  ;;  %2229 = vst.msk [vmem:[%s4505_s9 + $0x5] sm:$0x1] %vm498_vm4, %v2219_v55  ;;  %v2325_v63 = vadd.f32 %v4181_v38, %v2320_v61 }
0x223b   :  { %v2322_v4 = vpop.f32.mrf.mxu0 }
0x223c   :  { %2230 = vst.msk [vmem:[%s4505_s9 + $0xd] sm:$0x1] %vm498_vm4, %v2226_v16  ;;  %3594 = vtanh.f32 %v2325_v63  ;;  %v2987_v40 = vmul.f32 -1.442695, %v2325_v63  ;;  %v2577_v4 = vld [vmem:[%s4496_s0 + $0x7] sm:$0x1] }
0x223d   :  { %v3388_v6 = vpop.f32.mrf.mxu0 }
0x223e   :  { %3596 = vpow2.f32 %v2987_v40  ;;  %v2579_v6 = vpack.c.bf16 %v2577_v4, %v2577_v4 }
0x2240   :  { %v2623_v40 = vunpack.c.l.b16 %v2579_v6 }
0x2249   :  { %v3595_v36 = vpop.eup %3594 }
0x224a   :  { %2335 = vrot.lane.b32.xlu1 %v3595_v36, %s3714_s14 }
0x224b   :  { %v3597_v43 = vpop.eup %3596 }
0x224c   :  { %v2329_v9 = vadd.f32 1.0, %v3597_v43 }
0x224e   :  { %3598 = vrcp.f32 %v2329_v9 }
0x225b   :  { %v3599_v34 = vpop.eup %3598 }
0x225c   :  { %v2333_v18 = vmul.f32 %v3599_v34, %v4290_v49 }
0x22bc   :  { %v2336_v14 = vpop.permute.xlu1 %2335 }
0x22bd   :  { %v2338_v15 = vmul.f32 %v3599_v34, %v2336_v14 }
0x22bf   :  { %2340 = vrot.lane.b32.xlu0 %v2338_v15, %s3720_s12 }
0x22c3   :  { %2353 = vrot.lane.b32.xlu0 %v2351_v17, %s3720_s12 }
0x2331   :  { %v2341_v20 = vpop.permute.xlu0 %2340 }
0x2332   :  { %v4390_v21 = vadd.f32 %v2341_v20, %v2333_v18 }
0x2334   :  { %3600 = vtanh.f32 %v4390_v21 }
0x2335   :  { %v2354_v23 = vpop.permute.xlu0 %2353 }
0x2336   :  { %3394 = vmatmul.mubr.msk.bf16.vlgmr.msra.gmra.mxu1 %vm111_vm3, %v2354_v23 }
0x2337   :  { %3406 = vmatpush3.msra.mxu1 %v4297_v51  ;;  %3413 = vmatprep.mubr.msk.f32.mxu1 %vm3718_vm0, %v3717_v0 }
0x2338   :  { %3407 = vmatprep.subr.mxu1 %v3717_v0 }
0x2339   :  { %3408 = vmatpush3.msra.mxu1 %v4306_v26 }
0x233a   :  { %3409 = vmatprep.subr.mxu1 %v3717_v0 }
0x233b   :  { %3410 = vmatpush3.msra.mxu1 %v4313_v52 }
0x233c   :  { %3411 = vmatprep.subr.mxu1 %v3717_v0 }
0x233d   :  { %3412 = vmatpush3.msra.mxu1 %v4320_v53 }
0x233e   :  { %3424 = vmatprep.subr.bf16.mxu1 %v3717_v0 }
0x2341   :  { %v3601_v49 = vpop.eup %3600 }
0x2342   :  { %2346 = vrot.lane.b32.xlu1 %v3601_v49, %s3714_s14 }
0x23b4   :  { %v2347_v2 = vpop.permute.xlu1 %2346 }
0x23b5   :  { %v2349_v24 = vmul.f32 %v3599_v34, %v2347_v2 }
0x23b7   :  { %v2350_v25 = vpack.c.bf16 %v2349_v24, %v2349_v24 }
0x23b9   :  { %2399 = vrot.lane.b32.xlu1 %v2350_v25, %s3720_s12 }
0x23f6   :  { %v2392_v50 = vpop.f32.mrf.mxu1 }
0x23f8   :  { %v3395_v10 = vpop.f32.mrf.mxu1 }
0x23fa   :  { %v2395_v35 = vpop.f32.mrf.mxu1 }
0x23fc   :  { %v3396_v27 = vpop.f32.mrf.mxu1 }
0x242b   :  { %v2400_v28 = vpop.permute.xlu1 %2399 }
0x242c   :  { %3402 = vmatmul.mubr.msk.bf16.vlgmr.msra.gmra.mxu0 %vm111_vm3, %v2400_v28 }
0x242d   :  { %3417 = vmatpush3.bf16.msra.mxu0 %v4212_v12  ;;  %3420 = vmatprep.mubr.msk.bf16.mxu0 %vm3718_vm0, %v3717_v0 }
0x242e   :  { %3418 = vmatprep.subr.bf16.mxu0 %v3717_v0 }
0x2431   :  { %3419 = vmatpush3.bf16.msra.mxu0 %v4221_v13 }
0x2432   :  { %3430 = vmatprep.subr.bf16.mxu0 %v3717_v0 }
0x2434   :  { %3421 = vmatmul.mubr.msk.bf16.vlgmr.msra.gmra.mxu0 %vm111_vm3, %v2400_v28 }
0x2435   :  { %3431 = vmatpush3.bf16.msra.mxu0 %v4226_v31  ;;  %3434 = vmatprep.mubr.msk.bf16.mxu0 %vm3718_vm0, %v3717_v0 }
0x2436   :  { %3432 = vmatprep.subr.bf16.mxu0 %v3717_v0 }
0x2439   :  { %3433 = vmatpush3.bf16.msra.mxu0 %v4232_v32 }
0x243a   :  { %3446 = vmatprep.subr.mxu0 %v3717_v0 }
0x24ec   :  { %v2438_v12 = vpop.f32.mrf.mxu0 }
0x24ed   :  { %v2439_v11 = vadd.f32 %v2438_v12, %v2392_v50 }
0x24ee   :  { %v3403_v29 = vpop.f32.mrf.mxu0 }
0x24ef   :  { %v2444_v13 = vadd.f32 %v4239_v44, %v2439_v11 }
0x24f0   :  { %v2441_v41 = vpop.f32.mrf.mxu0 }
0x24f1   :  { %3602 = vtanh.f32 %v2444_v13  ;;  %v2990_v39 = vmul.f32 -1.442695, %v2444_v13 }
0x24f2   :  { %v3404_v60 = vpop.f32.mrf.mxu0 }
0x24f3   :  { %3604 = vpow2.f32 %v2990_v39 }
0x24f4   :  { %v2615_v37 = vpop.f32.mrf.mxu0 }
0x24f6   :  { %v3422_v30 = vpop.f32.mrf.mxu0 }
0x24f8   :  { %v2618_v31 = vpop.f32.mrf.mxu0 }
0x24fa   :  { %v3423_v33 = vpop.f32.mrf.mxu0 }
0x24fe   :  { %v3603_v48 = vpop.eup %3602 }
0x24ff   :  { %2454 = vrot.lane.b32.xlu0 %v3603_v48, %s3714_s14 }
0x2500   :  { %v3605_v32 = vpop.eup %3604 }
0x2501   :  { %v2448_v3 = vadd.f32 1.0, %v3605_v32 }
0x2503   :  { %3606 = vrcp.f32 %v2448_v3 }
0x2510   :  { %v3607_v7 = vpop.eup %3606 }
0x2511   :  { %v2452_v47 = vmul.f32 %v3607_v7, %v4344_v5  ;;  %v2578_v5 = vld [vmem:[%s4496_s0 + $0xf] sm:$0x1] }
0x2512   :  { %v2580_v63 = vpack.c.bf16 %v2578_v5, %v2578_v5 }
0x2514   :  { %v2624_v36 = vunpack.c.l.b16 %v2580_v63 }
0x2516   :  { %v2625_v43 = vrot.slane %v2624_v36, 7 }
0x2518   :  { %v2626_v9 = vsel %vm160_vm1, %v2625_v43, %v2623_v40 }
0x2519   :  { %v2627_v14 = vpack.c.b16 %v2626_v9, %v2626_v9 }
0x2571   :  { %v2455_v45 = vpop.permute.xlu0 %2454 }
0x2572   :  { %v2457_v46 = vmul.f32 %v3607_v7, %v2455_v45 }
0x2574   :  { %2459 = vrot.lane.b32.xlu1 %v2457_v46, %s3720_s12 }
0x25e6   :  { %v2460_v54 = vpop.permute.xlu1 %2459 }
0x25e7   :  { %v4424_v56 = vadd.f32 %v2460_v54, %v2452_v47 }
0x25e9   :  { %3608 = vtanh.f32 %v4424_v56 }
0x25f6   :  { %v3609_v57 = vpop.eup %3608 }
0x25f7   :  { %2465 = vrot.lane.b32.xlu0 %v3609_v57, %s3714_s14 }
0x2669   :  { %v2466_v58 = vpop.permute.xlu0 %2465 }
0x266a   :  { %v2468_v8 = vmul.f32 %v3607_v7, %v2466_v58 }
0x266c   :  { %v2991_v55 = vmul.f32 -1.442695, %v2468_v8 }
0x266e   :  { %3610 = vpow2.f32 %v2991_v55 }
0x267b   :  { %v3611_v61 = vpop.eup %3610 }
0x267c   :  { %v2472_v62 = vadd.f32 1.0, %v3611_v61 }
0x267e   :  { %3612 = vrcp.f32 %v2472_v62 }
0x268b   :  { %v3613_v16 = vpop.eup %3612 }
0x268c   :  { %2476 = vrot.lane.b32.xlu1 %v3613_v16, %s3720_s12 }
0x26fe   :  { %v2477_v34 = vpop.permute.xlu1 %2476 }
0x26ff   :  { %3414 = vmatmul.mubr.msk.f32.vlgmr.msra.gmra.mxu1 %vm111_vm3, %v2477_v34 }
0x2700   :  { %3425 = vmatpush3.bf16.msra.mxu1 %v4157_v59  ;;  %3426 = vmatprep.mubr.msk.bf16.mxu1 %vm3718_vm0, %v3717_v0 }
0x2701   :  { %3438 = vmatprep.subr.bf16.mxu1 %v3717_v0 }
0x2703   :  { %3427 = vmatmul.mubr.msk.bf16.vlgmr.msra.gmra.mxu1 %vm169_vm2, %v2627_v14 }
0x2704   :  { %3439 = vmatpush3.bf16.msra.mxu1 %v4263_v1  ;;  %3442 = vmatprep.mubr.msk.bf16.mxu1 %vm3718_vm0, %v3717_v0 }
0x2705   :  { %3440 = vmatprep.subr.bf16.mxu1 %v3717_v0 }
0x2708   :  { %3441 = vmatpush3.bf16.msra.mxu1 %v4269_v22 }
0x27bf   :  { %v2546_v15 = vpop.f32.mrf.mxu1 }
0x27c0   :  { %v2547_v17 = vadd.f32 %v4371_v19, %v2546_v15 }
0x27c1   :  { %v3415_v59 = vpop.f32.mrf.mxu1 }
0x27c2   :  { %v2557_v18 = vrot.slane %v2547_v17, %v3938_v42 }
0x27c3   :  { %v2665_v20 = vpop.f32.mrf.mxu1 }
0x27c4   :  { %v2558_v23 = vcombine.high %v2557_v18, %v2557_v18  ;;  %v2565_v49 = vrot.slane %v2557_v18, %v3938_v42  ;;  %v2666_v2 = vadd.f32 %v2665_v20, %v2615_v37 }
0x27c5   :  { %v3428_v24 = vpop.f32.mrf.mxu1 }
0x27c6   :  { %v2572_v1 = vrot.slane %v2558_v23, %v3938_v42  ;;  %2575 = vst.msk [vmem:[%s4505_s9 + $0x6] sm:$0x1] %vm498_vm4, %v2565_v49  ;;  %v2671_v22 = vadd.f32 %v4181_v38, %v2666_v2  ;;  %v2697_v38 = vpack.c.bf16 %v2468_v8, %v2468_v8 }
0x27c7   :  { %v2668_v25 = vpop.f32.mrf.mxu1 }
0x27c8   :  { %2576 = vst.msk [vmem:[%s4505_s9 + $0xe] sm:$0x1] %vm498_vm4, %v2572_v1  ;;  %3614 = vtanh.f32 %v2671_v22  ;;  %v2995_v35 = vmul.f32 -1.442695, %v2671_v22 }
0x27c9   :  { %v3429_v50 = vpop.f32.mrf.mxu1 }
0x27ca   :  { %3616 = vpow2.f32 %v2995_v35 }
0x27d5   :  { %v3615_v10 = vpop.eup %3614 }
0x27d6   :  { %2681 = vrot.lane.b32.xlu0 %v3615_v10, %s3714_s14 }
0x27d7   :  { %v3617_v27 = vpop.eup %3616 }
0x27d8   :  { %v2675_v28 = vadd.f32 1.0, %v3617_v27 }
0x27da   :  { %3618 = vrcp.f32 %v2675_v28 }
0x27e7   :  { %v3619_v12 = vpop.eup %3618 }
0x27e8   :  { %v2679_v13 = vmul.f32 %v3619_v12, %v4390_v21 }
0x2848   :  { %v2682_v11 = vpop.permute.xlu0 %2681 }
0x2849   :  { %v2684_v29 = vmul.f32 %v3619_v12, %v2682_v11 }
0x284b   :  { %2686 = vrot.lane.b32.xlu1 %v2684_v29, %s3720_s12 }
0x284f   :  { %2699 = vrot.lane.b32.xlu1 %v2697_v38, %s3720_s12 }
0x28bd   :  { %v2687_v41 = vpop.permute.xlu1 %2686 }
0x28be   :  { %v2689_v60 = vadd.f32 %v2687_v41, %v2679_v13 }
0x28c0   :  { %3620 = vtanh.f32 %v2689_v60 }
0x28c1   :  { %v2700_v37 = vpop.permute.xlu1 %2699 }
0x28c2   :  { %3435 = vmatmul.mubr.msk.bf16.vlgmr.msra.gmra.mxu0 %vm111_vm3, %v2700_v37 }
0x28c3   :  { %3447 = vmatpush3.msra.mxu0 %v4297_v51  ;;  %3454 = vmatprep.mubr.msk.f32.mxu0 %vm3718_vm0, %v3717_v0 }
0x28c4   :  { %3448 = vmatprep.subr.mxu0 %v3717_v0 }
0x28c5   :  { %3449 = vmatpush3.msra.mxu0 %v4306_v26 }
0x28c6   :  { %3450 = vmatprep.subr.mxu0 %v3717_v0 }
0x28c7   :  { %3451 = vmatpush3.msra.mxu0 %v4313_v52 }
0x28c8   :  { %3452 = vmatprep.subr.mxu0 %v3717_v0 }
0x28c9   :  { %3453 = vmatpush3.msra.mxu0 %v4320_v53 }
0x28cd   :  { %v3621_v21 = vpop.eup %3620 }
0x28ce   :  { %2692 = vrot.lane.b32.xlu0 %v3621_v21, %s3714_s14 }
0x2940   :  { %v2693_v30 = vpop.permute.xlu0 %2692 }
0x2941   :  { %v2695_v51 = vmul.f32 %v3619_v12, %v2693_v30 }
0x2943   :  { %v2696_v31 = vpack.c.bf16 %v2695_v51, %v2695_v51 }
0x2945   :  { %2745 = vrot.lane.b32.xlu0 %v2696_v31, %s3720_s12 }
0x2982   :  { %v2738_v33 = vpop.f32.mrf.mxu0 }
0x2984   :  { %v3436_v48 = vpop.f32.mrf.mxu0 }
0x2986   :  { %v2741_v39 = vpop.f32.mrf.mxu0 }
0x2988   :  { %v3437_v26 = vpop.f32.mrf.mxu0 }
0x29b7   :  { %v2746_v32 = vpop.permute.xlu0 %2745 }
0x29b8   :  { %3443 = vmatmul.mubr.msk.bf16.vlgmr.msra.gmra.mxu1 %vm111_vm3, %v2746_v32 }
0x2a78   :  { %v2784_v52 = vpop.f32.mrf.mxu1 }
0x2a79   :  { %v2785_v3 = vadd.f32 %v2784_v52, %v2738_v33 }
0x2a7a   :  { %v3444_v0 = vpop.f32.mrf.mxu1 }
0x2a7b   :  { %v2790_v53 = vadd.f32 %v4239_v44, %v2785_v3 }
0x2a7c   :  { %v2787_v7 = vpop.f32.mrf.mxu1 }
0x2a7d   :  { %3622 = vtanh.f32 %v2790_v53  ;;  %v2998_v47 = vmul.f32 -1.442695, %v2790_v53 }
0x2a7e   :  { %v3445_v45 = vpop.f32.mrf.mxu1 }
0x2a7f   :  { %3624 = vpow2.f32 %v2998_v47 }
0x2a8a   :  { %v3623_v46 = vpop.eup %3622 }
0x2a8b   :  { %2800 = vrot.lane.b32.xlu1 %v3623_v46, %s3714_s14 }
0x2a8c   :  { %v3625_v54 = vpop.eup %3624 }
0x2a8d   :  { %v2794_v57 = vadd.f32 1.0, %v3625_v54 }
0x2a8f   :  { %3626 = vrcp.f32 %v2794_v57 }
0x2a9c   :  { %v3627_v58 = vpop.eup %3626 }
0x2a9d   :  { %v2798_v61 = vmul.f32 %v3627_v58, %v4424_v56 }
0x2afd   :  { %v2801_v8 = vpop.permute.xlu1 %2800 }
0x2afe   :  { %v2803_v55 = vmul.f32 %v3627_v58, %v2801_v8 }
0x2b00   :  { %2805 = vrot.lane.b32.xlu0 %v2803_v55, %s3720_s12 }
0x2b72   :  { %v2806_v62 = vpop.permute.xlu0 %2805 }
0x2b73   :  { %v2808_v44 = vadd.f32 %v2806_v62, %v2798_v61 }
0x2b75   :  { %3628 = vtanh.f32 %v2808_v44 }
0x2b82   :  { %v3629_v16 = vpop.eup %3628 }
0x2b83   :  { %2811 = vrot.lane.b32.xlu1 %v3629_v16, %s3714_s14 }
0x2bf5   :  { %v2812_v5 = vpop.permute.xlu1 %2811 }
0x2bf6   :  { %v2814_v63 = vmul.f32 %v3627_v58, %v2812_v5 }
0x2bf8   :  { %v2999_v4 = vmul.f32 -1.442695, %v2814_v63 }
0x2bfa   :  { %3630 = vpow2.f32 %v2999_v4 }
0x2c07   :  { %v3631_v6 = vpop.eup %3630 }
0x2c08   :  { %v2818_v36 = vadd.f32 1.0, %v3631_v6 }
0x2c0a   :  { %3632 = vrcp.f32 %v2818_v36 }
0x2c17   :  { %v3633_v40 = vpop.eup %3632 }
0x2c18   :  { %2822 = vrot.lane.b32.xlu0 %v3633_v40, %s3720_s12 }
0x2c8a   :  { %v2823_v43 = vpop.permute.xlu0 %2822 }
0x2c8b   :  { %3455 = vmatmul.mubr.msk.f32.vlgmr.msra.gmra.mxu0 %vm111_vm3, %v2823_v43 }
0x2d4b   :  { %v2892_v56 = vpop.f32.mrf.mxu0 }
0x2d4c   :  { %v2893_v9 = vadd.f32 %v4371_v19, %v2892_v56 }
0x2d4d   :  { %v3456_v34 = vpop.f32.mrf.mxu0 }
0x2d4e   :  { %v2903_v14 = vrot.slane %v2893_v9, %v3938_v42 }
0x2d50   :  { %v2904_v15 = vcombine.high %v2903_v14, %v2903_v14  ;;  %v2911_v17 = vrot.slane %v2903_v14, %v3938_v42 }
0x2d52   :  { %v2918_v59 = vrot.slane %v2904_v15, %v3938_v42  ;;  %2921 = vst.msk [vmem:[%s4505_s9 + $0x7] sm:$0x1] %vm498_vm4, %v2911_v17 }
0x2d54   :  { %2922 = vst.msk [vmem:[%s4505_s9 + $0xf] sm:$0x1] %vm498_vm4, %v2918_v59 }
0x2d55   :  { %2927 = vsyncpa [#allocation3], 1 }
0x2d56   :  { %2928 = vsyncpa [#allocation5], 1 }

</bundles_post_ra>
